<compile_context>
chip_gen: v6e
topology: v6e:2x2x1
jax: 0.10.0
libtpu: 0.0.40
codegen_flags: <defaults>
</compile_context>

<pallas_src>
import jax
import jax.numpy as jnp
from jax import lax
from jax.experimental import pallas as pl
from jax.experimental.pallas import tpu as pltpu

EPS = 1e-5


def _mish(x):
    # x * tanh(softplus(x)) with a stable softplus (no intermediate inf).
    sp = jnp.maximum(x, 0.0) + jnp.log1p(jnp.exp(-jnp.abs(x)))
    return x * jnp.tanh(sp)


def _make_resblock_kernel(B, H, W):
    L = H * W
    # 3x3 taps: tap t = ky*3 + kx; offset in the flattened (H*W) lane axis.
    offs = [(ky - 1) * W + (kx - 1) for ky in range(3) for kx in range(3)]
    dxs = [kx - 1 for _ky in range(3) for kx in range(3)]
    n_bn = float(B * L)

    def kernel(x_ref, w1_ref, g1_ref, b1_ref, w2_ref, g2_ref, b2_ref,
               wsa_ref, masks_ref, o_ref):
        # column-boundary masks (precomputed in the wrapper), shape (1, L)
        mask_l = masks_ref[0:1, :]   # valid where x-coord >= 1     (kx == 0 taps)
        mask_r = masks_ref[1:2, :]   # valid where x-coord <= W - 2 (kx == 2 taps)

        def shift_cols(xb, off):
            # result[:, i] = xb[:, i + off] if 0 <= i + off < L else 0
            if off == 0:
                return xb
            z = jnp.zeros(xb.shape[:-1] + (abs(off),), xb.dtype)
            if off > 0:
                return jnp.concatenate([xb[:, off:], z], axis=-1)
            return jnp.concatenate([z, xb[:, :off]], axis=-1)

        def conv3x3(xb, wmat):
            # xb: (Cin, L); wmat: (Cout, 9*Cin). One im2col matmul per image.
            taps = []
            for off, dx in zip(offs, dxs):
                s = shift_cols(xb, off)
                if dx == -1:
                    s = s * mask_l
                elif dx == 1:
                    s = s * mask_r
                taps.append(s)
            xcol = jnp.concatenate(taps, axis=0)               # (9*Cin, L)
            return jnp.dot(wmat, xcol, preferred_element_type=jnp.float32)

        def bn_train(accs, g, b):
            # training-mode BN over (batch, spatial) per channel, single pass.
            s = sum(jnp.sum(a, axis=1, keepdims=True) for a in accs)
            ss = sum(jnp.sum(a * a, axis=1, keepdims=True) for a in accs)
            m = s / n_bn
            v = jnp.maximum(ss / n_bn - m * m, 0.0)
            scale = g * lax.rsqrt(v + EPS)
            shift = b - m * scale
            return [a * scale + shift for a in accs]

        w1 = w1_ref[...]
        w2 = w2_ref[...]
        wsa = wsa_ref[...]          # SA gamma already folded in
        g1 = g1_ref[...]
        b1 = b1_ref[...]
        g2 = g2_ref[...]
        b2 = b2_ref[...]

        # conv1 (3x3, pad 1, no bias) + BN1 (batch stats) + Mish
        acc1 = [conv3x3(x_ref[bi], w1) for bi in range(B)]
        h1 = [_mish(a) for a in bn_train(acc1, g1, b1)]

        # conv2 (3x3, pad 1, no bias) + BN2 (zero_bn layer: no activation)
        acc2 = [conv3x3(h, w2) for h in h1]
        h2 = bn_train(acc2, g2, b2)

        # SimpleSelfAttention (ks=1):  o = (Y Y^T) (gamma*Wsa) Y + Y  with Y = (NF, L)
        # (associativity: one L-length matmul instead of two), then residual
        # (idconv = pool = noop) + final Mish, stored lane-dense.
        for bi in range(B):
            y = h2[bi]                                               # (NF, L)
            xxt = jnp.einsum('fl,gl->fg', y, y,
                             preferred_element_type=jnp.float32)     # (NF, NF)
            mat = jnp.dot(xxt, wsa, preferred_element_type=jnp.float32)   # (NF, NF)
            o = jnp.dot(mat, y, preferred_element_type=jnp.float32) + y   # (NF, L)
            o_ref[bi] = _mish(o + x_ref[bi])

    return kernel


def resblock_pallas(x_nchw, p):
    x = x_nchw.astype(jnp.float32)
    B, C, H, W = x.shape
    L = H * W
    NH = p['w1'].shape[0]
    NF = p['w2'].shape[0]

    # NCHW with spatial flattened == channels-first lane-dense layout (free reshape).
    x_flat = x.reshape(B, C, L)

    # conv weights OIHW -> im2col layout (Cout, 9*Cin): index [f, (ky*3+kx)*Cin + c]
    w1col = jnp.transpose(p['w1'], (0, 2, 3, 1)).reshape(NH, 9 * C).astype(jnp.float32)
    w2col = jnp.transpose(p['w2'], (0, 2, 3, 1)).reshape(NF, 9 * NH).astype(jnp.float32)
    g1 = p['g1'].reshape(NH, 1).astype(jnp.float32)
    b1 = p['b1'].reshape(NH, 1).astype(jnp.float32)
    g2 = p['g2'].reshape(NF, 1).astype(jnp.float32)
    b2 = p['b2'].reshape(NF, 1).astype(jnp.float32)
    # fold SA gamma into the (spectral-normalized) conv1d weight: (Y Y^T)(gamma*Wsa)Y
    wsa_g = (p['gamma_sa'][0] * p['wsa']).astype(jnp.float32)

    # column-boundary masks for the lane-shifted 3x3 taps (tiny, precomputed once)
    col = jnp.arange(L, dtype=jnp.int32) % W
    masks = jnp.stack([(col >= 1), (col <= W - 2)], axis=0).astype(jnp.float32)

    kernel = _make_resblock_kernel(B, H, W)
    vmem = pl.BlockSpec(memory_space=pltpu.MemorySpace.VMEM)

    # Whole problem (~8 KiB of activations) fits trivially in VMEM: grid-less call.
    # TODO(synk): for scaled-up shapes add a ("parallel", ...) batch/row grid (uses the
    #             second TensorCore on v7x, bounds VMEM tiles); BN batch stats would
    #             then need a cross-tile accumulator design.
    out = pl.pallas_call(
        kernel,
        out_shape=jax.ShapeDtypeStruct((B, NF, L), jnp.float32),
        in_specs=[vmem] * 9,
        out_specs=vmem,
    )(x_flat, w1col, g1, b1, w2col, g2, b2, wsa_g, masks)

    return out.reshape(B, NF, H, W)   # still NCHW; trailing reshape is free


def make_params(key, cin=4, nh=4, nf=4):
    ks = jax.random.split(key, 6)
    w1 = jax.random.normal(ks[0], (nh, cin, 3, 3), jnp.float32) * (2.0 / (cin * 9)) ** 0.5
    g1 = jnp.ones((nh,), jnp.float32)            # BN1 init: weight=1, bias=0
    b1 = jnp.zeros((nh,), jnp.float32)
    w2 = jax.random.normal(ks[1], (nf, nh, 3, 3), jnp.float32) * (2.0 / (nh * 9)) ** 0.5
    # NOTE: the module's zero_bn init would set g2=0 (and SA gamma=0), which makes
    # the branch vanish; use deterministic nonzero values so the hot path is exercised.
    g2 = 0.5 + jax.random.uniform(ks[2], (nf,), jnp.float32)
    b2 = 0.1 * jax.random.normal(ks[3], (nf,), jnp.float32)
    # SimpleSelfAttention conv1d (ks=1) weight, kaiming init + spectral normalization
    wsa = jax.random.normal(ks[4], (nf, nf), jnp.float32) * (2.0 / nf) ** 0.5
    u = jax.random.normal(ks[5], (nf,), jnp.float32)
    u = u / jnp.linalg.norm(u)
    v = wsa.T @ u
    for _ in range(10):                          # power iteration (spectral_norm glue)
        v = wsa.T @ u
        v = v / jnp.linalg.norm(v)
        u = wsa @ v
        u = u / jnp.linalg.norm(u)
    sigma = u @ wsa @ v
    wsa_n = wsa / sigma
    gamma_sa = jnp.array([0.3], jnp.float32)
    return dict(w1=w1, g1=g1, b1=b1, w2=w2, g2=g2, b2=b2, wsa=wsa_n, gamma_sa=gamma_sa)


def ref_forward(x, p):
    """Pure-JAX reference of the PyTorch forward (NCHW)."""
    dn = lax.conv_dimension_numbers(x.shape, p['w1'].shape, ('NCHW', 'OIHW', 'NCHW'))

    def conv3(a, w):
        return lax.conv_general_dilated(a, w, (1, 1), ((1, 1), (1, 1)),
                                        dimension_numbers=dn)

    def bn(a, g, b):
        m = jnp.mean(a, axis=(0, 2, 3), keepdims=True)
        v = jnp.mean((a - m) ** 2, axis=(0, 2, 3), keepdims=True)
        return (a - m) / jnp.sqrt(v + EPS) * g.reshape(1, -1, 1, 1) + b.reshape(1, -1, 1, 1)

    def mish(a):
        return a * jnp.tanh(jax.nn.softplus(a))

    h = mish(bn(conv3(x, p['w1']), p['g1'], p['b1']))
    h = bn(conv3(h, p['w2']), p['g2'], p['b2'])
    B, C, H, W = h.shape
    xf = h.reshape(B, C, H * W)
    convx = jnp.einsum('fg,bgl->bfl', p['wsa'], xf)
    xxT = jnp.einsum('bfl,bgl->bfg', xf, xf)
    o = jnp.einsum('bfg,bgl->bfl', xxT, convx)
    o = p['gamma_sa'][0] * o + xf
    return mish(o.reshape(B, C, H, W) + x)


if __name__ == "__main__":
    key = jax.random.PRNGKey(0)
    kx, kp = jax.random.split(key)
    x = jax.random.normal(kx, (2, 4, 16, 16), jnp.float32)   # NCHW like PyTorch
    params = make_params(kp, cin=4, nh=4, nf=4)

    out = jax.jit(resblock_pallas)(x, params)
    out = jax.block_until_ready(out)

    ref = ref_forward(x, params)
    assert out.shape == x.shape, (out.shape, x.shape)
    err = float(jnp.max(jnp.abs(out - ref)))
    if not bool(jnp.allclose(out, ref, rtol=5e-3, atol=5e-3)):
        raise SystemExit(f"mismatch vs reference: max abs err = {err}")
    print("KERNEL_OK")
</pallas_src>

<mosaic_0001>
module attributes {stable_mosaic.version = 11 : i64} {
  func.func @kernel(%arg0: memref<2x4x256xf32, #tpu.memory_space<vmem>>, %arg1: memref<4x36xf32, #tpu.memory_space<vmem>>, %arg2: memref<4x1xf32, #tpu.memory_space<vmem>>, %arg3: memref<4x1xf32, #tpu.memory_space<vmem>>, %arg4: memref<4x36xf32, #tpu.memory_space<vmem>>, %arg5: memref<4x1xf32, #tpu.memory_space<vmem>>, %arg6: memref<4x1xf32, #tpu.memory_space<vmem>>, %arg7: memref<4x4xf32, #tpu.memory_space<vmem>>, %arg8: memref<2x256xf32, #tpu.memory_space<vmem>>, %arg9: memref<2x4x256xf32, #tpu.memory_space<vmem>>) attributes {dimension_semantics = [], scalar_prefetch = 0 : i64, scratch_operands = 0 : i64, tpu.core_type = #tpu.core_type<tc>} {
    %c0 = arith.constant 0 : index
    %c0_0 = arith.constant 0 : index
    %0 = vector.load %arg8[%c0, %c0_0] : memref<2x256xf32, #tpu.memory_space<vmem>>, vector<1x256xf32>
    %c1 = arith.constant 1 : index
    %c0_1 = arith.constant 0 : index
    %1 = vector.load %arg8[%c1, %c0_1] : memref<2x256xf32, #tpu.memory_space<vmem>>, vector<1x256xf32>
    %c0_2 = arith.constant 0 : index
    %c0_3 = arith.constant 0 : index
    %2 = vector.load %arg1[%c0_2, %c0_3] : memref<4x36xf32, #tpu.memory_space<vmem>>, vector<4x36xf32>
    %c0_4 = arith.constant 0 : index
    %c0_5 = arith.constant 0 : index
    %3 = vector.load %arg4[%c0_4, %c0_5] : memref<4x36xf32, #tpu.memory_space<vmem>>, vector<4x36xf32>
    %c0_6 = arith.constant 0 : index
    %c0_7 = arith.constant 0 : index
    %4 = vector.load %arg7[%c0_6, %c0_7] : memref<4x4xf32, #tpu.memory_space<vmem>>, vector<4x4xf32>
    %c0_8 = arith.constant 0 : index
    %c0_9 = arith.constant 0 : index
    %5 = vector.load %arg2[%c0_8, %c0_9] : memref<4x1xf32, #tpu.memory_space<vmem>>, vector<4x1xf32>
    %c0_10 = arith.constant 0 : index
    %c0_11 = arith.constant 0 : index
    %6 = vector.load %arg3[%c0_10, %c0_11] : memref<4x1xf32, #tpu.memory_space<vmem>>, vector<4x1xf32>
    %c0_12 = arith.constant 0 : index
    %c0_13 = arith.constant 0 : index
    %7 = vector.load %arg5[%c0_12, %c0_13] : memref<4x1xf32, #tpu.memory_space<vmem>>, vector<4x1xf32>
    %c0_14 = arith.constant 0 : index
    %c0_15 = arith.constant 0 : index
    %8 = vector.load %arg6[%c0_14, %c0_15] : memref<4x1xf32, #tpu.memory_space<vmem>>, vector<4x1xf32>
    %c0_16 = arith.constant 0 : index
    %c0_17 = arith.constant 0 : index
    %c0_18 = arith.constant 0 : index
    %9 = vector.load %arg0[%c0_16, %c0_17, %c0_18] : memref<2x4x256xf32, #tpu.memory_space<vmem>>, vector<1x4x256xf32>
    %10 = vector.shape_cast %9 : vector<1x4x256xf32> to vector<4x256xf32>
    %cst = arith.constant 0.000000e+00 : f32
    %11 = vector.broadcast %cst : f32 to vector<4x17xf32>
    %12 = vector.extract_strided_slice %10 {offsets = [0, 0], sizes = [4, 239], strides = [1, 1]} : vector<4x256xf32> to vector<4x239xf32>
    %13 = tpu.concatenate %11, %12 in 1 : vector<4x17xf32>, vector<4x239xf32> -> vector<4x256xf32>
    %14 = vector.broadcast %0 : vector<1x256xf32> to vector<4x256xf32>
    %15 = arith.mulf %13, %14 : vector<4x256xf32>
    %cst_19 = arith.constant 0.000000e+00 : f32
    %16 = vector.broadcast %cst_19 : f32 to vector<4x16xf32>
    %17 = vector.extract_strided_slice %10 {offsets = [0, 0], sizes = [4, 240], strides = [1, 1]} : vector<4x256xf32> to vector<4x240xf32>
    %18 = tpu.concatenate %16, %17 in 1 : vector<4x16xf32>, vector<4x240xf32> -> vector<4x256xf32>
    %cst_20 = arith.constant 0.000000e+00 : f32
    %19 = vector.broadcast %cst_20 : f32 to vector<4x15xf32>
    %20 = vector.extract_strided_slice %10 {offsets = [0, 0], sizes = [4, 241], strides = [1, 1]} : vector<4x256xf32> to vector<4x241xf32>
    %21 = tpu.concatenate %19, %20 in 1 : vector<4x15xf32>, vector<4x241xf32> -> vector<4x256xf32>
    %22 = vector.broadcast %1 : vector<1x256xf32> to vector<4x256xf32>
    %23 = arith.mulf %21, %22 : vector<4x256xf32>
    %cst_21 = arith.constant 0.000000e+00 : f32
    %24 = vector.broadcast %cst_21 : f32 to vector<4x1xf32>
    %25 = vector.extract_strided_slice %10 {offsets = [0, 0], sizes = [4, 255], strides = [1, 1]} : vector<4x256xf32> to vector<4x255xf32>
    %26 = tpu.concatenate %24, %25 in 1 : vector<4x1xf32>, vector<4x255xf32> -> vector<4x256xf32>
    %27 = vector.broadcast %0 : vector<1x256xf32> to vector<4x256xf32>
    %28 = arith.mulf %26, %27 : vector<4x256xf32>
    %cst_22 = arith.constant 0.000000e+00 : f32
    %29 = vector.broadcast %cst_22 : f32 to vector<4x1xf32>
    %30 = vector.extract_strided_slice %10 {offsets = [0, 1], sizes = [4, 255], strides = [1, 1]} : vector<4x256xf32> to vector<4x255xf32>
    %31 = tpu.concatenate %30, %29 in 1 : vector<4x255xf32>, vector<4x1xf32> -> vector<4x256xf32>
    %32 = vector.broadcast %1 : vector<1x256xf32> to vector<4x256xf32>
    %33 = arith.mulf %31, %32 : vector<4x256xf32>
    %cst_23 = arith.constant 0.000000e+00 : f32
    %34 = vector.broadcast %cst_23 : f32 to vector<4x15xf32>
    %35 = vector.extract_strided_slice %10 {offsets = [0, 15], sizes = [4, 241], strides = [1, 1]} : vector<4x256xf32> to vector<4x241xf32>
    %36 = tpu.concatenate %35, %34 in 1 : vector<4x241xf32>, vector<4x15xf32> -> vector<4x256xf32>
    %37 = vector.broadcast %0 : vector<1x256xf32> to vector<4x256xf32>
    %38 = arith.mulf %36, %37 : vector<4x256xf32>
    %cst_24 = arith.constant 0.000000e+00 : f32
    %39 = vector.broadcast %cst_24 : f32 to vector<4x16xf32>
    %40 = vector.extract_strided_slice %10 {offsets = [0, 16], sizes = [4, 240], strides = [1, 1]} : vector<4x256xf32> to vector<4x240xf32>
    %41 = tpu.concatenate %40, %39 in 1 : vector<4x240xf32>, vector<4x16xf32> -> vector<4x256xf32>
    %cst_25 = arith.constant 0.000000e+00 : f32
    %42 = vector.broadcast %cst_25 : f32 to vector<4x17xf32>
    %43 = vector.extract_strided_slice %10 {offsets = [0, 17], sizes = [4, 239], strides = [1, 1]} : vector<4x256xf32> to vector<4x239xf32>
    %44 = tpu.concatenate %43, %42 in 1 : vector<4x239xf32>, vector<4x17xf32> -> vector<4x256xf32>
    %45 = vector.broadcast %1 : vector<1x256xf32> to vector<4x256xf32>
    %46 = arith.mulf %44, %45 : vector<4x256xf32>
    %47 = tpu.concatenate %15, %18, %23, %28, %10, %33, %38, %41, %46 in 0 : vector<4x256xf32>, vector<4x256xf32>, vector<4x256xf32>, vector<4x256xf32>, vector<4x256xf32>, vector<4x256xf32>, vector<4x256xf32>, vector<4x256xf32>, vector<4x256xf32> -> vector<36x256xf32>
    %cst_26 = arith.constant dense<0.000000e+00> : vector<4x256xf32>
    %48 = tpu.matmul %2, %47, %cst_26 {dimension_numbers = #tpu.dot_dimension_numbers<[1], [0], [0], [1], [0, 0, 1, 1], [], []>} : vector<4x36xf32>, vector<36x256xf32>, vector<4x256xf32> -> vector<4x256xf32>
    %c1_27 = arith.constant 1 : index
    %c0_28 = arith.constant 0 : index
    %c0_29 = arith.constant 0 : index
    %49 = vector.load %arg0[%c1_27, %c0_28, %c0_29] : memref<2x4x256xf32, #tpu.memory_space<vmem>>, vector<1x4x256xf32>
    %50 = vector.shape_cast %49 : vector<1x4x256xf32> to vector<4x256xf32>
    %cst_30 = arith.constant 0.000000e+00 : f32
    %51 = vector.broadcast %cst_30 : f32 to vector<4x17xf32>
    %52 = vector.extract_strided_slice %50 {offsets = [0, 0], sizes = [4, 239], strides = [1, 1]} : vector<4x256xf32> to vector<4x239xf32>
    %53 = tpu.concatenate %51, %52 in 1 : vector<4x17xf32>, vector<4x239xf32> -> vector<4x256xf32>
    %54 = vector.broadcast %0 : vector<1x256xf32> to vector<4x256xf32>
    %55 = arith.mulf %53, %54 : vector<4x256xf32>
    %cst_31 = arith.constant 0.000000e+00 : f32
    %56 = vector.broadcast %cst_31 : f32 to vector<4x16xf32>
    %57 = vector.extract_strided_slice %50 {offsets = [0, 0], sizes = [4, 240], strides = [1, 1]} : vector<4x256xf32> to vector<4x240xf32>
    %58 = tpu.concatenate %56, %57 in 1 : vector<4x16xf32>, vector<4x240xf32> -> vector<4x256xf32>
    %cst_32 = arith.constant 0.000000e+00 : f32
    %59 = vector.broadcast %cst_32 : f32 to vector<4x15xf32>
    %60 = vector.extract_strided_slice %50 {offsets = [0, 0], sizes = [4, 241], strides = [1, 1]} : vector<4x256xf32> to vector<4x241xf32>
    %61 = tpu.concatenate %59, %60 in 1 : vector<4x15xf32>, vector<4x241xf32> -> vector<4x256xf32>
    %62 = vector.broadcast %1 : vector<1x256xf32> to vector<4x256xf32>
    %63 = arith.mulf %61, %62 : vector<4x256xf32>
    %cst_33 = arith.constant 0.000000e+00 : f32
    %64 = vector.broadcast %cst_33 : f32 to vector<4x1xf32>
    %65 = vector.extract_strided_slice %50 {offsets = [0, 0], sizes = [4, 255], strides = [1, 1]} : vector<4x256xf32> to vector<4x255xf32>
    %66 = tpu.concatenate %64, %65 in 1 : vector<4x1xf32>, vector<4x255xf32> -> vector<4x256xf32>
    %67 = vector.broadcast %0 : vector<1x256xf32> to vector<4x256xf32>
    %68 = arith.mulf %66, %67 : vector<4x256xf32>
    %cst_34 = arith.constant 0.000000e+00 : f32
    %69 = vector.broadcast %cst_34 : f32 to vector<4x1xf32>
    %70 = vector.extract_strided_slice %50 {offsets = [0, 1], sizes = [4, 255], strides = [1, 1]} : vector<4x256xf32> to vector<4x255xf32>
    %71 = tpu.concatenate %70, %69 in 1 : vector<4x255xf32>, vector<4x1xf32> -> vector<4x256xf32>
    %72 = vector.broadcast %1 : vector<1x256xf32> to vector<4x256xf32>
    %73 = arith.mulf %71, %72 : vector<4x256xf32>
    %cst_35 = arith.constant 0.000000e+00 : f32
    %74 = vector.broadcast %cst_35 : f32 to vector<4x15xf32>
    %75 = vector.extract_strided_slice %50 {offsets = [0, 15], sizes = [4, 241], strides = [1, 1]} : vector<4x256xf32> to vector<4x241xf32>
    %76 = tpu.concatenate %75, %74 in 1 : vector<4x241xf32>, vector<4x15xf32> -> vector<4x256xf32>
    %77 = vector.broadcast %0 : vector<1x256xf32> to vector<4x256xf32>
    %78 = arith.mulf %76, %77 : vector<4x256xf32>
    %cst_36 = arith.constant 0.000000e+00 : f32
    %79 = vector.broadcast %cst_36 : f32 to vector<4x16xf32>
    %80 = vector.extract_strided_slice %50 {offsets = [0, 16], sizes = [4, 240], strides = [1, 1]} : vector<4x256xf32> to vector<4x240xf32>
    %81 = tpu.concatenate %80, %79 in 1 : vector<4x240xf32>, vector<4x16xf32> -> vector<4x256xf32>
    %cst_37 = arith.constant 0.000000e+00 : f32
    %82 = vector.broadcast %cst_37 : f32 to vector<4x17xf32>
    %83 = vector.extract_strided_slice %50 {offsets = [0, 17], sizes = [4, 239], strides = [1, 1]} : vector<4x256xf32> to vector<4x239xf32>
    %84 = tpu.concatenate %83, %82 in 1 : vector<4x239xf32>, vector<4x17xf32> -> vector<4x256xf32>
    %85 = vector.broadcast %1 : vector<1x256xf32> to vector<4x256xf32>
    %86 = arith.mulf %84, %85 : vector<4x256xf32>
    %87 = tpu.concatenate %55, %58, %63, %68, %50, %73, %78, %81, %86 in 0 : vector<4x256xf32>, vector<4x256xf32>, vector<4x256xf32>, vector<4x256xf32>, vector<4x256xf32>, vector<4x256xf32>, vector<4x256xf32>, vector<4x256xf32>, vector<4x256xf32> -> vector<36x256xf32>
    %cst_38 = arith.constant dense<0.000000e+00> : vector<4x256xf32>
    %88 = tpu.matmul %2, %87, %cst_38 {dimension_numbers = #tpu.dot_dimension_numbers<[1], [0], [0], [1], [0, 0, 1, 1], [], []>} : vector<4x36xf32>, vector<36x256xf32>, vector<4x256xf32> -> vector<4x256xf32>
    %cst_39 = arith.constant dense<0.000000e+00> : vector<4xf32>
    %89 = vector.multi_reduction <add>, %48, %cst_39 [1] : vector<4x256xf32> to vector<4xf32>
    %90 = vector.shape_cast %89 : vector<4xf32> to vector<4x1xf32>
    %cst_40 = arith.constant 0.000000e+00 : f32
    %91 = vector.broadcast %cst_40 : f32 to vector<4x1xf32>
    %92 = arith.addf %91, %90 : vector<4x1xf32>
    %cst_41 = arith.constant dense<0.000000e+00> : vector<4xf32>
    %93 = vector.multi_reduction <add>, %88, %cst_41 [1] : vector<4x256xf32> to vector<4xf32>
    %94 = vector.shape_cast %93 : vector<4xf32> to vector<4x1xf32>
    %95 = arith.addf %92, %94 : vector<4x1xf32>
    %96 = arith.mulf %48, %48 : vector<4x256xf32>
    %cst_42 = arith.constant dense<0.000000e+00> : vector<4xf32>
    %97 = vector.multi_reduction <add>, %96, %cst_42 [1] : vector<4x256xf32> to vector<4xf32>
    %98 = vector.shape_cast %97 : vector<4xf32> to vector<4x1xf32>
    %cst_43 = arith.constant 0.000000e+00 : f32
    %99 = vector.broadcast %cst_43 : f32 to vector<4x1xf32>
    %100 = arith.addf %99, %98 : vector<4x1xf32>
    %101 = arith.mulf %88, %88 : vector<4x256xf32>
    %cst_44 = arith.constant dense<0.000000e+00> : vector<4xf32>
    %102 = vector.multi_reduction <add>, %101, %cst_44 [1] : vector<4x256xf32> to vector<4xf32>
    %103 = vector.shape_cast %102 : vector<4xf32> to vector<4x1xf32>
    %104 = arith.addf %100, %103 : vector<4x1xf32>
    %cst_45 = arith.constant 5.120000e+02 : f32
    %105 = vector.broadcast %cst_45 : f32 to vector<4x1xf32>
    %106 = arith.divf %95, %105 : vector<4x1xf32>
    %cst_46 = arith.constant 5.120000e+02 : f32
    %107 = vector.broadcast %cst_46 : f32 to vector<4x1xf32>
    %108 = arith.divf %104, %107 : vector<4x1xf32>
    %109 = arith.mulf %106, %106 : vector<4x1xf32>
    %110 = arith.subf %108, %109 : vector<4x1xf32>
    %cst_47 = arith.constant 0.000000e+00 : f32
    %111 = vector.broadcast %cst_47 : f32 to vector<4x1xf32>
    %112 = arith.maximumf %110, %111 : vector<4x1xf32>
    %cst_48 = arith.constant 9.99999974E-6 : f32
    %113 = vector.broadcast %cst_48 : f32 to vector<4x1xf32>
    %114 = arith.addf %112, %113 : vector<4x1xf32>
    %115 = math.rsqrt %114 : vector<4x1xf32>
    %116 = arith.mulf %5, %115 : vector<4x1xf32>
    %117 = arith.mulf %106, %116 : vector<4x1xf32>
    %118 = arith.subf %6, %117 : vector<4x1xf32>
    %119 = vector.broadcast %116 : vector<4x1xf32> to vector<4x256xf32>
    %120 = arith.mulf %48, %119 : vector<4x256xf32>
    %121 = vector.broadcast %118 : vector<4x1xf32> to vector<4x256xf32>
    %122 = arith.addf %120, %121 : vector<4x256xf32>
    %123 = vector.broadcast %116 : vector<4x1xf32> to vector<4x256xf32>
    %124 = arith.mulf %88, %123 : vector<4x256xf32>
    %125 = vector.broadcast %118 : vector<4x1xf32> to vector<4x256xf32>
    %126 = arith.addf %124, %125 : vector<4x256xf32>
    %cst_49 = arith.constant 0.000000e+00 : f32
    %127 = vector.broadcast %cst_49 : f32 to vector<4x256xf32>
    %128 = arith.maximumf %122, %127 : vector<4x256xf32>
    %129 = math.absf %122 : vector<4x256xf32>
    %cst_50 = arith.constant 0.000000e+00 : f32
    %130 = vector.broadcast %cst_50 : f32 to vector<4x256xf32>
    %131 = arith.subf %130, %129 : vector<4x256xf32>
    %132 = math.exp %131 : vector<4x256xf32>
    %133 = math.log1p %132 : vector<4x256xf32>
    %134 = arith.addf %128, %133 : vector<4x256xf32>
    %135 = math.tanh %134 : vector<4x256xf32>
    %136 = arith.mulf %122, %135 : vector<4x256xf32>
    %cst_51 = arith.constant 0.000000e+00 : f32
    %137 = vector.broadcast %cst_51 : f32 to vector<4x256xf32>
    %138 = arith.maximumf %126, %137 : vector<4x256xf32>
    %139 = math.absf %126 : vector<4x256xf32>
    %cst_52 = arith.constant 0.000000e+00 : f32
    %140 = vector.broadcast %cst_52 : f32 to vector<4x256xf32>
    %141 = arith.subf %140, %139 : vector<4x256xf32>
    %142 = math.exp %141 : vector<4x256xf32>
    %143 = math.log1p %142 : vector<4x256xf32>
    %144 = arith.addf %138, %143 : vector<4x256xf32>
    %145 = math.tanh %144 : vector<4x256xf32>
    %146 = arith.mulf %126, %145 : vector<4x256xf32>
    %cst_53 = arith.constant 0.000000e+00 : f32
    %147 = vector.broadcast %cst_53 : f32 to vector<4x17xf32>
    %148 = vector.extract_strided_slice %136 {offsets = [0, 0], sizes = [4, 239], strides = [1, 1]} : vector<4x256xf32> to vector<4x239xf32>
    %149 = tpu.concatenate %147, %148 in 1 : vector<4x17xf32>, vector<4x239xf32> -> vector<4x256xf32>
    %150 = vector.broadcast %0 : vector<1x256xf32> to vector<4x256xf32>
    %151 = arith.mulf %149, %150 : vector<4x256xf32>
    %cst_54 = arith.constant 0.000000e+00 : f32
    %152 = vector.broadcast %cst_54 : f32 to vector<4x16xf32>
    %153 = vector.extract_strided_slice %136 {offsets = [0, 0], sizes = [4, 240], strides = [1, 1]} : vector<4x256xf32> to vector<4x240xf32>
    %154 = tpu.concatenate %152, %153 in 1 : vector<4x16xf32>, vector<4x240xf32> -> vector<4x256xf32>
    %cst_55 = arith.constant 0.000000e+00 : f32
    %155 = vector.broadcast %cst_55 : f32 to vector<4x15xf32>
    %156 = vector.extract_strided_slice %136 {offsets = [0, 0], sizes = [4, 241], strides = [1, 1]} : vector<4x256xf32> to vector<4x241xf32>
    %157 = tpu.concatenate %155, %156 in 1 : vector<4x15xf32>, vector<4x241xf32> -> vector<4x256xf32>
    %158 = vector.broadcast %1 : vector<1x256xf32> to vector<4x256xf32>
    %159 = arith.mulf %157, %158 : vector<4x256xf32>
    %cst_56 = arith.constant 0.000000e+00 : f32
    %160 = vector.broadcast %cst_56 : f32 to vector<4x1xf32>
    %161 = vector.extract_strided_slice %136 {offsets = [0, 0], sizes = [4, 255], strides = [1, 1]} : vector<4x256xf32> to vector<4x255xf32>
    %162 = tpu.concatenate %160, %161 in 1 : vector<4x1xf32>, vector<4x255xf32> -> vector<4x256xf32>
    %163 = vector.broadcast %0 : vector<1x256xf32> to vector<4x256xf32>
    %164 = arith.mulf %162, %163 : vector<4x256xf32>
    %cst_57 = arith.constant 0.000000e+00 : f32
    %165 = vector.broadcast %cst_57 : f32 to vector<4x1xf32>
    %166 = vector.extract_strided_slice %136 {offsets = [0, 1], sizes = [4, 255], strides = [1, 1]} : vector<4x256xf32> to vector<4x255xf32>
    %167 = tpu.concatenate %166, %165 in 1 : vector<4x255xf32>, vector<4x1xf32> -> vector<4x256xf32>
    %168 = vector.broadcast %1 : vector<1x256xf32> to vector<4x256xf32>
    %169 = arith.mulf %167, %168 : vector<4x256xf32>
    %cst_58 = arith.constant 0.000000e+00 : f32
    %170 = vector.broadcast %cst_58 : f32 to vector<4x15xf32>
    %171 = vector.extract_strided_slice %136 {offsets = [0, 15], sizes = [4, 241], strides = [1, 1]} : vector<4x256xf32> to vector<4x241xf32>
    %172 = tpu.concatenate %171, %170 in 1 : vector<4x241xf32>, vector<4x15xf32> -> vector<4x256xf32>
    %173 = vector.broadcast %0 : vector<1x256xf32> to vector<4x256xf32>
    %174 = arith.mulf %172, %173 : vector<4x256xf32>
    %cst_59 = arith.constant 0.000000e+00 : f32
    %175 = vector.broadcast %cst_59 : f32 to vector<4x16xf32>
    %176 = vector.extract_strided_slice %136 {offsets = [0, 16], sizes = [4, 240], strides = [1, 1]} : vector<4x256xf32> to vector<4x240xf32>
    %177 = tpu.concatenate %176, %175 in 1 : vector<4x240xf32>, vector<4x16xf32> -> vector<4x256xf32>
    %cst_60 = arith.constant 0.000000e+00 : f32
    %178 = vector.broadcast %cst_60 : f32 to vector<4x17xf32>
    %179 = vector.extract_strided_slice %136 {offsets = [0, 17], sizes = [4, 239], strides = [1, 1]} : vector<4x256xf32> to vector<4x239xf32>
    %180 = tpu.concatenate %179, %178 in 1 : vector<4x239xf32>, vector<4x17xf32> -> vector<4x256xf32>
    %181 = vector.broadcast %1 : vector<1x256xf32> to vector<4x256xf32>
    %182 = arith.mulf %180, %181 : vector<4x256xf32>
    %183 = tpu.concatenate %151, %154, %159, %164, %136, %169, %174, %177, %182 in 0 : vector<4x256xf32>, vector<4x256xf32>, vector<4x256xf32>, vector<4x256xf32>, vector<4x256xf32>, vector<4x256xf32>, vector<4x256xf32>, vector<4x256xf32>, vector<4x256xf32> -> vector<36x256xf32>
    %cst_61 = arith.constant dense<0.000000e+00> : vector<4x256xf32>
    %184 = tpu.matmul %3, %183, %cst_61 {dimension_numbers = #tpu.dot_dimension_numbers<[1], [0], [0], [1], [0, 0, 1, 1], [], []>} : vector<4x36xf32>, vector<36x256xf32>, vector<4x256xf32> -> vector<4x256xf32>
    %cst_62 = arith.constant 0.000000e+00 : f32
    %185 = vector.broadcast %cst_62 : f32 to vector<4x17xf32>
    %186 = vector.extract_strided_slice %146 {offsets = [0, 0], sizes = [4, 239], strides = [1, 1]} : vector<4x256xf32> to vector<4x239xf32>
    %187 = tpu.concatenate %185, %186 in 1 : vector<4x17xf32>, vector<4x239xf32> -> vector<4x256xf32>
    %188 = vector.broadcast %0 : vector<1x256xf32> to vector<4x256xf32>
    %189 = arith.mulf %187, %188 : vector<4x256xf32>
    %cst_63 = arith.constant 0.000000e+00 : f32
    %190 = vector.broadcast %cst_63 : f32 to vector<4x16xf32>
    %191 = vector.extract_strided_slice %146 {offsets = [0, 0], sizes = [4, 240], strides = [1, 1]} : vector<4x256xf32> to vector<4x240xf32>
    %192 = tpu.concatenate %190, %191 in 1 : vector<4x16xf32>, vector<4x240xf32> -> vector<4x256xf32>
    %cst_64 = arith.constant 0.000000e+00 : f32
    %193 = vector.broadcast %cst_64 : f32 to vector<4x15xf32>
    %194 = vector.extract_strided_slice %146 {offsets = [0, 0], sizes = [4, 241], strides = [1, 1]} : vector<4x256xf32> to vector<4x241xf32>
    %195 = tpu.concatenate %193, %194 in 1 : vector<4x15xf32>, vector<4x241xf32> -> vector<4x256xf32>
    %196 = vector.broadcast %1 : vector<1x256xf32> to vector<4x256xf32>
    %197 = arith.mulf %195, %196 : vector<4x256xf32>
    %cst_65 = arith.constant 0.000000e+00 : f32
    %198 = vector.broadcast %cst_65 : f32 to vector<4x1xf32>
    %199 = vector.extract_strided_slice %146 {offsets = [0, 0], sizes = [4, 255], strides = [1, 1]} : vector<4x256xf32> to vector<4x255xf32>
    %200 = tpu.concatenate %198, %199 in 1 : vector<4x1xf32>, vector<4x255xf32> -> vector<4x256xf32>
    %201 = vector.broadcast %0 : vector<1x256xf32> to vector<4x256xf32>
    %202 = arith.mulf %200, %201 : vector<4x256xf32>
    %cst_66 = arith.constant 0.000000e+00 : f32
    %203 = vector.broadcast %cst_66 : f32 to vector<4x1xf32>
    %204 = vector.extract_strided_slice %146 {offsets = [0, 1], sizes = [4, 255], strides = [1, 1]} : vector<4x256xf32> to vector<4x255xf32>
    %205 = tpu.concatenate %204, %203 in 1 : vector<4x255xf32>, vector<4x1xf32> -> vector<4x256xf32>
    %206 = vector.broadcast %1 : vector<1x256xf32> to vector<4x256xf32>
    %207 = arith.mulf %205, %206 : vector<4x256xf32>
    %cst_67 = arith.constant 0.000000e+00 : f32
    %208 = vector.broadcast %cst_67 : f32 to vector<4x15xf32>
    %209 = vector.extract_strided_slice %146 {offsets = [0, 15], sizes = [4, 241], strides = [1, 1]} : vector<4x256xf32> to vector<4x241xf32>
    %210 = tpu.concatenate %209, %208 in 1 : vector<4x241xf32>, vector<4x15xf32> -> vector<4x256xf32>
    %211 = vector.broadcast %0 : vector<1x256xf32> to vector<4x256xf32>
    %212 = arith.mulf %210, %211 : vector<4x256xf32>
    %cst_68 = arith.constant 0.000000e+00 : f32
    %213 = vector.broadcast %cst_68 : f32 to vector<4x16xf32>
    %214 = vector.extract_strided_slice %146 {offsets = [0, 16], sizes = [4, 240], strides = [1, 1]} : vector<4x256xf32> to vector<4x240xf32>
    %215 = tpu.concatenate %214, %213 in 1 : vector<4x240xf32>, vector<4x16xf32> -> vector<4x256xf32>
    %cst_69 = arith.constant 0.000000e+00 : f32
    %216 = vector.broadcast %cst_69 : f32 to vector<4x17xf32>
    %217 = vector.extract_strided_slice %146 {offsets = [0, 17], sizes = [4, 239], strides = [1, 1]} : vector<4x256xf32> to vector<4x239xf32>
    %218 = tpu.concatenate %217, %216 in 1 : vector<4x239xf32>, vector<4x17xf32> -> vector<4x256xf32>
    %219 = vector.broadcast %1 : vector<1x256xf32> to vector<4x256xf32>
    %220 = arith.mulf %218, %219 : vector<4x256xf32>
    %221 = tpu.concatenate %189, %192, %197, %202, %146, %207, %212, %215, %220 in 0 : vector<4x256xf32>, vector<4x256xf32>, vector<4x256xf32>, vector<4x256xf32>, vector<4x256xf32>, vector<4x256xf32>, vector<4x256xf32>, vector<4x256xf32>, vector<4x256xf32> -> vector<36x256xf32>
    %cst_70 = arith.constant dense<0.000000e+00> : vector<4x256xf32>
    %222 = tpu.matmul %3, %221, %cst_70 {dimension_numbers = #tpu.dot_dimension_numbers<[1], [0], [0], [1], [0, 0, 1, 1], [], []>} : vector<4x36xf32>, vector<36x256xf32>, vector<4x256xf32> -> vector<4x256xf32>
    %cst_71 = arith.constant dense<0.000000e+00> : vector<4xf32>
    %223 = vector.multi_reduction <add>, %184, %cst_71 [1] : vector<4x256xf32> to vector<4xf32>
    %224 = vector.shape_cast %223 : vector<4xf32> to vector<4x1xf32>
    %cst_72 = arith.constant 0.000000e+00 : f32
    %225 = vector.broadcast %cst_72 : f32 to vector<4x1xf32>
    %226 = arith.addf %225, %224 : vector<4x1xf32>
    %cst_73 = arith.constant dense<0.000000e+00> : vector<4xf32>
    %227 = vector.multi_reduction <add>, %222, %cst_73 [1] : vector<4x256xf32> to vector<4xf32>
    %228 = vector.shape_cast %227 : vector<4xf32> to vector<4x1xf32>
    %229 = arith.addf %226, %228 : vector<4x1xf32>
    %230 = arith.mulf %184, %184 : vector<4x256xf32>
    %cst_74 = arith.constant dense<0.000000e+00> : vector<4xf32>
    %231 = vector.multi_reduction <add>, %230, %cst_74 [1] : vector<4x256xf32> to vector<4xf32>
    %232 = vector.shape_cast %231 : vector<4xf32> to vector<4x1xf32>
    %cst_75 = arith.constant 0.000000e+00 : f32
    %233 = vector.broadcast %cst_75 : f32 to vector<4x1xf32>
    %234 = arith.addf %233, %232 : vector<4x1xf32>
    %235 = arith.mulf %222, %222 : vector<4x256xf32>
    %cst_76 = arith.constant dense<0.000000e+00> : vector<4xf32>
    %236 = vector.multi_reduction <add>, %235, %cst_76 [1] : vector<4x256xf32> to vector<4xf32>
    %237 = vector.shape_cast %236 : vector<4xf32> to vector<4x1xf32>
    %238 = arith.addf %234, %237 : vector<4x1xf32>
    %cst_77 = arith.constant 5.120000e+02 : f32
    %239 = vector.broadcast %cst_77 : f32 to vector<4x1xf32>
    %240 = arith.divf %229, %239 : vector<4x1xf32>
    %cst_78 = arith.constant 5.120000e+02 : f32
    %241 = vector.broadcast %cst_78 : f32 to vector<4x1xf32>
    %242 = arith.divf %238, %241 : vector<4x1xf32>
    %243 = arith.mulf %240, %240 : vector<4x1xf32>
    %244 = arith.subf %242, %243 : vector<4x1xf32>
    %cst_79 = arith.constant 0.000000e+00 : f32
    %245 = vector.broadcast %cst_79 : f32 to vector<4x1xf32>
    %246 = arith.maximumf %244, %245 : vector<4x1xf32>
    %cst_80 = arith.constant 9.99999974E-6 : f32
    %247 = vector.broadcast %cst_80 : f32 to vector<4x1xf32>
    %248 = arith.addf %246, %247 : vector<4x1xf32>
    %249 = math.rsqrt %248 : vector<4x1xf32>
    %250 = arith.mulf %7, %249 : vector<4x1xf32>
    %251 = arith.mulf %240, %250 : vector<4x1xf32>
    %252 = arith.subf %8, %251 : vector<4x1xf32>
    %253 = vector.broadcast %250 : vector<4x1xf32> to vector<4x256xf32>
    %254 = arith.mulf %184, %253 : vector<4x256xf32>
    %255 = vector.broadcast %252 : vector<4x1xf32> to vector<4x256xf32>
    %256 = arith.addf %254, %255 : vector<4x256xf32>
    %257 = vector.broadcast %250 : vector<4x1xf32> to vector<4x256xf32>
    %258 = arith.mulf %222, %257 : vector<4x256xf32>
    %259 = vector.broadcast %252 : vector<4x1xf32> to vector<4x256xf32>
    %260 = arith.addf %258, %259 : vector<4x256xf32>
    "tpu.trace_start"() <{level = 10 : i32, message = "fl,gl->fg"}> : () -> ()
    %cst_81 = arith.constant dense<0.000000e+00> : vector<4x4xf32>
    %261 = tpu.matmul %256, %256, %cst_81 {dimension_numbers = #tpu.dot_dimension_numbers<[1], [1], [0], [0], [0, 0, 1, 0], [], []>} : vector<4x256xf32>, vector<4x256xf32>, vector<4x4xf32> -> vector<4x4xf32>
    "tpu.trace_stop"() : () -> ()
    %cst_82 = arith.constant dense<0.000000e+00> : vector<4x4xf32>
    %262 = tpu.matmul %261, %4, %cst_82 {dimension_numbers = #tpu.dot_dimension_numbers<[1], [0], [0], [1], [0, 0, 1, 1], [], []>} : vector<4x4xf32>, vector<4x4xf32>, vector<4x4xf32> -> vector<4x4xf32>
    %cst_83 = arith.constant dense<0.000000e+00> : vector<4x256xf32>
    %263 = tpu.matmul %262, %256, %cst_83 {dimension_numbers = #tpu.dot_dimension_numbers<[1], [0], [0], [1], [0, 0, 1, 1], [], []>} : vector<4x4xf32>, vector<4x256xf32>, vector<4x256xf32> -> vector<4x256xf32>
    %264 = arith.addf %263, %256 : vector<4x256xf32>
    %c0_84 = arith.constant 0 : index
    %c0_85 = arith.constant 0 : index
    %c0_86 = arith.constant 0 : index
    %265 = vector.load %arg0[%c0_84, %c0_85, %c0_86] : memref<2x4x256xf32, #tpu.memory_space<vmem>>, vector<1x4x256xf32>
    %266 = vector.shape_cast %265 : vector<1x4x256xf32> to vector<4x256xf32>
    %267 = arith.addf %264, %266 : vector<4x256xf32>
    %cst_87 = arith.constant 0.000000e+00 : f32
    %268 = vector.broadcast %cst_87 : f32 to vector<4x256xf32>
    %269 = arith.maximumf %267, %268 : vector<4x256xf32>
    %270 = math.absf %267 : vector<4x256xf32>
    %cst_88 = arith.constant 0.000000e+00 : f32
    %271 = vector.broadcast %cst_88 : f32 to vector<4x256xf32>
    %272 = arith.subf %271, %270 : vector<4x256xf32>
    %273 = math.exp %272 : vector<4x256xf32>
    %274 = math.log1p %273 : vector<4x256xf32>
    %275 = arith.addf %269, %274 : vector<4x256xf32>
    %276 = math.tanh %275 : vector<4x256xf32>
    %277 = arith.mulf %267, %276 : vector<4x256xf32>
    %c0_89 = arith.constant 0 : index
    %c0_90 = arith.constant 0 : index
    %c0_91 = arith.constant 0 : index
    %278 = vector.load %arg9[%c0_89, %c0_90, %c0_91] : memref<2x4x256xf32, #tpu.memory_space<vmem>>, vector<1x4x256xf32>
    %279 = vector.shape_cast %278 : vector<1x4x256xf32> to vector<4x256xf32>
    %280 = vector.shape_cast %277 : vector<4x256xf32> to vector<1x4x256xf32>
    tpu.vector_store %arg9[%c0_89, %c0_90, %c0_91], %280 {strides = array<i32>} : memref<2x4x256xf32, #tpu.memory_space<vmem>>, vector<1x4x256xf32>,
    "tpu.trace_start"() <{level = 10 : i32, message = "fl,gl->fg"}> : () -> ()
    %cst_92 = arith.constant dense<0.000000e+00> : vector<4x4xf32>
    %281 = tpu.matmul %260, %260, %cst_92 {dimension_numbers = #tpu.dot_dimension_numbers<[1], [1], [0], [0], [0, 0, 1, 0], [], []>} : vector<4x256xf32>, vector<4x256xf32>, vector<4x4xf32> -> vector<4x4xf32>
    "tpu.trace_stop"() : () -> ()
    %cst_93 = arith.constant dense<0.000000e+00> : vector<4x4xf32>
    %282 = tpu.matmul %281, %4, %cst_93 {dimension_numbers = #tpu.dot_dimension_numbers<[1], [0], [0], [1], [0, 0, 1, 1], [], []>} : vector<4x4xf32>, vector<4x4xf32>, vector<4x4xf32> -> vector<4x4xf32>
    %cst_94 = arith.constant dense<0.000000e+00> : vector<4x256xf32>
    %283 = tpu.matmul %282, %260, %cst_94 {dimension_numbers = #tpu.dot_dimension_numbers<[1], [0], [0], [1], [0, 0, 1, 1], [], []>} : vector<4x4xf32>, vector<4x256xf32>, vector<4x256xf32> -> vector<4x256xf32>
    %284 = arith.addf %283, %260 : vector<4x256xf32>
    %c1_95 = arith.constant 1 : index
    %c0_96 = arith.constant 0 : index
    %c0_97 = arith.constant 0 : index
    %285 = vector.load %arg0[%c1_95, %c0_96, %c0_97] : memref<2x4x256xf32, #tpu.memory_space<vmem>>, vector<1x4x256xf32>
    %286 = vector.shape_cast %285 : vector<1x4x256xf32> to vector<4x256xf32>
    %287 = arith.addf %284, %286 : vector<4x256xf32>
    %cst_98 = arith.constant 0.000000e+00 : f32
    %288 = vector.broadcast %cst_98 : f32 to vector<4x256xf32>
    %289 = arith.maximumf %287, %288 : vector<4x256xf32>
    %290 = math.absf %287 : vector<4x256xf32>
    %cst_99 = arith.constant 0.000000e+00 : f32
    %291 = vector.broadcast %cst_99 : f32 to vector<4x256xf32>
    %292 = arith.subf %291, %290 : vector<4x256xf32>
    %293 = math.exp %292 : vector<4x256xf32>
    %294 = math.log1p %293 : vector<4x256xf32>
    %295 = arith.addf %289, %294 : vector<4x256xf32>
    %296 = math.tanh %295 : vector<4x256xf32>
    %297 = arith.mulf %287, %296 : vector<4x256xf32>
    %c1_100 = arith.constant 1 : index
    %c0_101 = arith.constant 0 : index
    %c0_102 = arith.constant 0 : index
    %298 = vector.load %arg9[%c1_100, %c0_101, %c0_102] : memref<2x4x256xf32, #tpu.memory_space<vmem>>, vector<1x4x256xf32>
    %299 = vector.shape_cast %298 : vector<1x4x256xf32> to vector<4x256xf32>
    %300 = vector.shape_cast %297 : vector<4x256xf32> to vector<1x4x256xf32>
    tpu.vector_store %arg9[%c1_100, %c0_101, %c0_102], %300 {strides = array<i32>} : memref<2x4x256xf32, #tpu.memory_space<vmem>>, vector<1x4x256xf32>,
    return
  }
}

</mosaic_0001>

<bundles_post_ra>
// kernel: resblock_pallas.1
= control target key start
LH: loop header
LB: loop body
LE: loop exit
PB: predicated region body
PF: predicated region fallthrough
CT: control target
= control target key end

     0   :  { %s1652_s13 = smov 127   ;;  %s1653_s14 = smov 111   ;;  %v1658_v4 = vmov 0.0   ;;  %v55_v5 = vlaneseq  ;;  %vm142_vm0 = vcmask 908288   ;;  %vm172_vm1 = vcmask 1043456   ;;  %s2148_s0 = inlined_call_operand.vmem [shape: f32[2,4,256], index: 0, kind: input, shape index: {}]   ;;  %s2149_s8 = inlined_call_operand.vmem [shape: f32[2,256], index: 8, kind: input, shape index: {}]   ;;  %s2150_s1 = inlined_call_operand.vmem [shape: f32[4,36], index: 1, kind: input, shape index: {}]   ;;  %s2151_s2 = inlined_call_operand.vmem [shape: f32[4,1], index: 2, kind: input, shape index: {}]   ;;  %s2152_s3 = inlined_call_operand.vmem [shape: f32[4,1], index: 3, kind: input, shape index: {}]   ;;  %s2153_s4 = inlined_call_operand.vmem [shape: f32[4,36], index: 4, kind: input, shape index: {}]   ;;  %s2154_s5 = inlined_call_operand.vmem [shape: f32[4,1], index: 5, kind: input, shape index: {}]   ;;  %s2155_s6 = inlined_call_operand.vmem [shape: f32[4,1], index: 6, kind: input, shape index: {}]   ;;  %s2156_s7 = inlined_call_operand.vmem [shape: f32[4,4], index: 7, kind: input, shape index: {}]   ;;  %s2157_s9 = inlined_call_operand.vmem [shape: f32[2,4,256], index: 9, kind: output, shape index: {}]  }
   0x1   :  { %v1716_v0 = vld [vmem:[%s2148_s0] sm:$0xff]  ;;  %v1721_v1 = vld [vmem:[%s2148_s0 + $0x8] sm:$0xff]  ;;  %s1654_s15 = smov 113   ;;  %s1655_s16 = smov 112   ;;  %255 = vmatprep.mubr.f32.mxu0 %v1658_v4  ;;  %441 = vmatprep.mubr.f32.mxu1 %v1658_v4  ;;  %vm123_vm2 = vcmask 924672   ;;  %vm134_vm3 = vcmask 916480  }
   0x2   :  { %v1725_v2 = vcombine.high %v1716_v0, %v1716_v0  ;;  %v1733_v3 = vcombine.high %v1721_v1, %v1721_v1  ;;  %s1656_s17 = smov 1   ;;  %s1657_s18 = smov 15   ;;  %v56_v6 = vshrl.u32 %v55_v5, 7  ;;  %v1543_v8 = vld [vmem:[%s2149_s8 + $0x1] ss:$2 sm:$0x3] }
   0x3   :  { %s1659_s19 = smov 17   ;;  %s1660_s20 = smov 16   ;;  %v32_v15 = vld [vmem:[%s2149_s8] ss:$2 sm:$0x3]  ;;  %vm112_vm4 = vcmask 1039360  }
   0x4   :  { %110 = vrot.lane.b32.xlu1 %v1725_v2, %s1652_s13  ;;  %140 = vrot.lane.b32.xlu0 %v1725_v2, %s1653_s14  ;;  %v61_v7 = vsub.s32 1, %v56_v6  ;;  %v57_v14 = vsub.s32 0, %v56_v6  ;;  %vm101_vm5 = vcmask 7168   ;;  %vm79_vm6 = vcmask 121856  }
   0x5   :  { %vm49_vm7 = vcmask 138240   ;;  %vm71_vm8 = vcmask 130048   ;;  %vm181_vm9 = vcmask 293888   ;;  %vm1662_vm14 = vmmov 0  }
   0x6   :  { %v1800_v9 = vrot.slane %v1543_v8, %v61_v7  ;;  %v1809_v19 = vrot.slane %v32_v15, %v61_v7  ;;  %v1811_v20 = vrot.slane %v1543_v8, %v57_v14  ;;  %v1833_v48 = vrot.slane %v32_v15, %v57_v14 }
   0x7   :  { %vm1068_vm15 = vcmask 31744  }
   0x8   :  { %121 = vrot.lane.b32.xlu1 %v1725_v2, %s1654_s15  ;;  %332 = vrot.lane.b32.xlu0 %v1733_v3, %s1653_s14 }
   0xc   :  { %138 = vrot.lane.b32.xlu1 %v1716_v0, %s1653_s14  ;;  %132 = vrot.lane.b32.xlu0 %v1725_v2, %s1655_s16 }
  0x10   :  { %315 = vrot.lane.b32.xlu1 %v1733_v3, %s1654_s15  ;;  %305 = vrot.lane.b32.xlu0 %v1733_v3, %s1652_s13 }
  0x14   :  { %330 = vrot.lane.b32.xlu1 %v1721_v1, %s1653_s14  ;;  %325 = vrot.lane.b32.xlu0 %v1733_v3, %s1655_s16 }
  0x18   :  { %119 = vrot.lane.b32.xlu1 %v1716_v0, %s1654_s15  ;;  %108 = vrot.lane.b32.xlu0 %v1716_v0, %s1652_s13 }
  0x1c   :  { %303 = vrot.lane.b32.xlu1 %v1721_v1, %s1652_s13  ;;  %130 = vrot.lane.b32.xlu0 %v1716_v0, %s1655_s16 }
  0x20   :  { %323 = vrot.lane.b32.xlu1 %v1721_v1, %s1655_s16  ;;  %313 = vrot.lane.b32.xlu0 %v1721_v1, %s1654_s15 }
  0x24   :  { %99 = vrot.lane.b32.xlu1 %v1725_v2, %s1656_s17  ;;  %97 = vrot.lane.b32.xlu0 %v1716_v0, %s1656_s17 }
  0x28   :  { %295 = vrot.lane.b32.xlu1 %v1733_v3, %s1656_s17  ;;  %293 = vrot.lane.b32.xlu0 %v1721_v1, %s1656_s17 }
  0x2c   :  { %77 = vrot.lane.b32.xlu1 %v1725_v2, %s1657_s18  ;;  %75 = vrot.lane.b32.xlu0 %v1716_v0, %s1657_s18 }
  0x30   :  { %285 = vrot.lane.b32.xlu1 %v1733_v3, %s1657_s18  ;;  %283 = vrot.lane.b32.xlu0 %v1721_v1, %s1657_s18 }
  0x34   :  { %47 = vrot.lane.b32.xlu1 %v1725_v2, %s1659_s19  ;;  %45 = vrot.lane.b32.xlu0 %v1716_v0, %s1659_s19 }
  0x38   :  { %69 = vrot.lane.b32.xlu1 %v1725_v2, %s1660_s20  ;;  %67 = vrot.lane.b32.xlu0 %v1716_v0, %s1660_s20 }
  0x3c   :  { %268 = vrot.lane.b32.xlu1 %v1733_v3, %s1659_s19  ;;  %266 = vrot.lane.b32.xlu0 %v1721_v1, %s1659_s19 }
  0x40   :  { %278 = vrot.lane.b32.xlu1 %v1733_v3, %s1660_s20  ;;  %276 = vrot.lane.b32.xlu0 %v1721_v1, %s1660_s20 }
  0x76   :  { %v111_v10 = vpop.permute.xlu1 %110  ;;  %v141_v11 = vpop.permute.xlu0 %140 }
  0x77   :  { %v146_v12 = vsel %vm142_vm0, %v141_v11, 0.0  ;;  %v116_v38 = vsel %vm112_vm4, %v111_v10, 0.0 }
  0x78   :  { %v148_v13 = vmul.f32 %v146_v12, %v1800_v9  ;;  %v118_v45 = vmul.f32 %v116_v38, %v1800_v9 }
  0x7a   :  { %v122_v16 = vpop.permute.xlu1 %121  ;;  %1544 = vmatprep.subr.msk.mxu0 %vm172_vm1, %v148_v13  ;;  %v333_v17 = vpop.permute.xlu0 %332  ;;  %v164_v53 = vrot.slane %v118_v45, 4 }
  0x7b   :  { %v337_v18 = vsel %vm142_vm0, %v333_v17, 0.0  ;;  %v127_v22 = vsel %vm123_vm2, %v122_v16, 0.0 }
  0x7c   :  { %v339_v21 = vmul.f32 %v337_v18, %v1800_v9  ;;  %v129_v27 = vmul.f32 %v127_v22, %v1809_v19  ;;  %v178_v8 = vsel %vm172_vm1, %v1725_v2, %v164_v53 }
  0x7e   :  { %v139_v23 = vpop.permute.xlu1 %138  ;;  %1548 = vmatprep.subr.msk.mxu1 %vm172_vm1, %v339_v21  ;;  %v133_v24 = vpop.permute.xlu0 %132 }
  0x7f   :  { %v143_v25 = vsel %vm142_vm0, %v139_v23, %v141_v11  ;;  %v137_v26 = vsel %vm134_vm3, %v133_v24, 0.0 }
  0x80   :  { %v147_v28 = vmul.f32 %v143_v25, %v1811_v20  ;;  %v169_v29 = vrot.slane %v137_v26, 4 }
  0x82   :  { %v316_v30 = vpop.permute.xlu1 %315  ;;  %1545 = vmatpush1.msk.msra.mxu0 %vm172_vm1, %v147_v28  ;;  %v306_v31 = vpop.permute.xlu0 %305  ;;  %v180_v32 = vsel %vm172_vm1, %v129_v27, %v169_v29 }
  0x83   :  { %215 = vmatprep.subr.mxu0 %v180_v32  ;;  %v320_v33 = vsel %vm123_vm2, %v316_v30, 0.0  ;;  %v310_v47 = vsel %vm112_vm4, %v306_v31, 0.0 }
  0x84   :  { %v322_v39 = vmul.f32 %v320_v33, %v1809_v19  ;;  %v312_v54 = vmul.f32 %v310_v47, %v1800_v9 }
  0x86   :  { %v331_v34 = vpop.permute.xlu1 %330  ;;  %v326_v35 = vpop.permute.xlu0 %325  ;;  %v355_v5 = vrot.slane %v312_v54, 4 }
  0x87   :  { %v334_v36 = vsel %vm142_vm0, %v331_v34, %v333_v17  ;;  %v329_v37 = vsel %vm134_vm3, %v326_v35, 0.0 }
  0x88   :  { %v338_v40 = vmul.f32 %v334_v36, %v1811_v20  ;;  %v360_v41 = vrot.slane %v329_v37, 4  ;;  %v368_v17 = vsel %vm172_vm1, %v1733_v3, %v355_v5  ;;  %v35_v5 = vld [vmem:[%s2150_s1] sm:$0xf] }
  0x8a   :  { %v120_v42 = vpop.permute.xlu1 %119  ;;  %1549 = vmatpush1.msk.msra.mxu1 %vm172_vm1, %v338_v40  ;;  %v109_v43 = vpop.permute.xlu0 %108  ;;  %v370_v44 = vsel %vm172_vm1, %v322_v39, %v360_v41 }
  0x8b   :  { %v113_v46 = vsel %vm112_vm4, %v109_v43, %v111_v10  ;;  %401 = vmatprep.subr.mxu1 %v370_v44  ;;  %v124_v50 = vsel %vm123_vm2, %v120_v42, %v122_v16 }
  0x8c   :  { %v117_v49 = vmul.f32 %v113_v46, %v1811_v20  ;;  %v128_v57 = vmul.f32 %v124_v50, %v1833_v48 }
  0x8e   :  { %v304_v51 = vpop.permute.xlu1 %303  ;;  %v131_v52 = vpop.permute.xlu0 %130  ;;  %v163_v58 = vrot.slane %v117_v49, 4 }
  0x8f   :  { %v307_v55 = vsel %vm112_vm4, %v304_v51, %v306_v31  ;;  %v135_v56 = vsel %vm134_vm3, %v131_v52, %v133_v24 }
  0x90   :  { %v311_v59 = vmul.f32 %v307_v55, %v1811_v20  ;;  %v168_v60 = vrot.slane %v135_v56, 4  ;;  %v177_v13 = vsel %vm172_vm1, %v1716_v0, %v163_v58 }
  0x92   :  { %v324_v61 = vpop.permute.xlu1 %323  ;;  %v314_v62 = vpop.permute.xlu0 %313  ;;  %v179_v63 = vsel %vm172_vm1, %v128_v57, %v168_v60  ;;  %v354_v10 = vrot.slane %v311_v59, 4 }
  0x93   :  { %v327_v6 = vsel %vm134_vm3, %v324_v61, %v326_v35  ;;  %v317_v7 = vsel %vm123_vm2, %v314_v62, %v316_v30  ;;  %216 = vmatpush1.msra.mxu0 %v179_v63 }
  0x94   :  { %v359_v11 = vrot.slane %v327_v6, 4  ;;  %v321_v12 = vmul.f32 %v317_v7, %v1833_v48  ;;  %217 = vmatprep.subr.mxu0 %v178_v8  ;;  %v367_v21 = vsel %vm172_vm1, %v1721_v1, %v354_v10 }
  0x95   :  { %218 = vmatpush1.msra.mxu0 %v177_v13 }
  0x96   :  { %v100_v14 = vpop.permute.xlu1 %99  ;;  %v98_v15 = vpop.permute.xlu0 %97  ;;  %v369_v16 = vsel %vm172_vm1, %v321_v12, %v359_v11 }
  0x97   :  { %402 = vmatpush1.msra.mxu1 %v369_v16  ;;  %v102_v2 = vsel %vm101_vm5, %v98_v15, %v100_v14  ;;  %v105_v18 = vsel %vm101_vm5, 0.0, %v98_v15 }
  0x98   :  { %403 = vmatprep.subr.mxu1 %v368_v17  ;;  %v106_v23 = vmul.f32 %v105_v18, %v1833_v48  ;;  %v107_v24 = vmul.f32 %v102_v2, %v1809_v19 }
  0x99   :  { %404 = vmatpush1.msra.mxu1 %v367_v21 }
  0x9a   :  { %v296_v0 = vpop.permute.xlu1 %295  ;;  %v294_v22 = vpop.permute.xlu0 %293  ;;  %v156_v28 = vrot.slane %v106_v23, 4  ;;  %v157_v29 = vrot.slane %v107_v24, 4 }
  0x9b   :  { %v297_v25 = vsel %vm101_vm5, %v294_v22, %v296_v0  ;;  %v300_v3 = vsel %vm101_vm5, 0.0, %v294_v22 }
  0x9c   :  { %v301_v31 = vmul.f32 %v300_v3, %v1833_v48  ;;  %v302_v32 = vmul.f32 %v297_v25, %v1809_v19 }
  0x9e   :  { %v78_v26 = vpop.permute.xlu1 %77  ;;  %v76_v27 = vpop.permute.xlu0 %75  ;;  %v347_v41 = vrot.slane %v301_v31, 4  ;;  %v348_v42 = vrot.slane %v302_v32, 4 }
  0x9f   :  { %v80_v30 = vsel %vm79_vm6, %v76_v27, %v78_v26  ;;  %v83_v1 = vsel %vm79_vm6, 0.0, %v76_v27 }
  0xa0   :  { %v95_v33 = vmul.f32 %v1811_v20, %v83_v1  ;;  %v96_v34 = vmul.f32 %v1800_v9, %v80_v30 }
  0xa2   :  { %v286_v35 = vpop.permute.xlu1 %285  ;;  %v284_v36 = vpop.permute.xlu0 %283  ;;  %v176_v37 = vsel %vm172_vm1, %v96_v34, %v157_v29  ;;  %v175_v38 = vsel %vm172_vm1, %v95_v33, %v156_v28 }
  0xa3   :  { %v287_v39 = vsel %vm79_vm6, %v284_v36, %v286_v35  ;;  %v290_v40 = vsel %vm79_vm6, 0.0, %v284_v36  ;;  %219 = vmatprep.subr.mxu0 %v176_v37  ;;  %v1661_v37 = vmov 0  }
  0xa4   :  { %v291_v43 = vmul.f32 %v290_v40, %v1811_v20  ;;  %v292_v44 = vmul.f32 %v287_v39, %v1800_v9  ;;  %220 = vmatpush1.msra.mxu0 %v175_v38  ;;  %1594 = vset.pattern.permute.xlu1 %v1661_v37 }
  0xa5   :  { %1595 = vset.pattern.permute.xlu0 %v1661_v37 }
  0xa6   :  { %v48_v45 = vpop.permute.xlu1 %47  ;;  %v46_v46 = vpop.permute.xlu0 %45  ;;  %v366_v47 = vsel %vm172_vm1, %v292_v44, %v348_v42  ;;  %v365_v49 = vsel %vm172_vm1, %v291_v43, %v347_v41 }
  0xa7   :  { %405 = vmatprep.subr.mxu1 %v366_v47  ;;  %v50_v50 = vsel %vm49_vm7, %v46_v46, %v48_v45  ;;  %v53_v51 = vsel %vm49_vm7, 0.0, %v46_v46 }
  0xa8   :  { %406 = vmatpush1.msra.mxu1 %v365_v49  ;;  %v65_v56 = vmul.f32 %v1833_v48, %v53_v51  ;;  %v66_v57 = vmul.f32 %v1809_v19, %v50_v50  ;;  %v38_v51 = vld [vmem:[%s2151_s2] sm:$0xf] }
  0xaa   :  { %v70_v52 = vpop.permute.xlu1 %69  ;;  %v68_v53 = vpop.permute.xlu0 %67 }
  0xab   :  { %v72_v54 = vsel %vm71_vm8, %v68_v53, %v70_v52  ;;  %v74_v55 = vsel %vm71_vm8, 0.0, %v68_v53 }
  0xac   :  { %v150_v58 = vrot.slane %v74_v55, 4  ;;  %v151_v59 = vrot.slane %v72_v54, 4  ;;  %v39_v54 = vld [vmem:[%s2152_s3] sm:$0xf] }
  0xae   :  { %v269_v60 = vpop.permute.xlu1 %268  ;;  %v267_v61 = vpop.permute.xlu0 %266  ;;  %v174_v62 = vsel %vm172_vm1, %v66_v57, %v151_v59  ;;  %v173_v63 = vsel %vm172_vm1, %v65_v56, %v150_v58 }
  0xaf   :  { %221 = vmatprep.subr.mxu0 %v174_v62  ;;  %v270_v6 = vsel %vm49_vm7, %v267_v61, %v269_v60  ;;  %v273_v7 = vsel %vm49_vm7, 0.0, %v267_v61 }
  0xb0   :  { %222 = vmatpush1.msra.mxu0 %v173_v63  ;;  %v274_v13 = vmul.f32 %v273_v7, %v1833_v48  ;;  %v275_v14 = vmul.f32 %v270_v6, %v1809_v19 }
  0xb1   :  { %1546 = vmatmul.mubr.msk.f32.vlgmr.msra.gmra.mxu0 %vm181_vm9, %v35_v5 }
  0xb2   :  { %v279_v8 = vpop.permute.xlu1 %278  ;;  %v277_v10 = vpop.permute.xlu0 %276  ;;  %752 = vmatprep.mubr.f32.mxu0 %v1658_v4 }
  0xb3   :  { %v280_v11 = vsel %vm71_vm8, %v277_v10, %v279_v8  ;;  %v282_v12 = vsel %vm71_vm8, 0.0, %v277_v10 }
  0xb4   :  { %v341_v15 = vrot.slane %v282_v12, 4  ;;  %v342_v16 = vrot.slane %v280_v11, 4 }
  0xb6   :  { %v364_v17 = vsel %vm172_vm1, %v275_v14, %v342_v16  ;;  %v363_v2 = vsel %vm172_vm1, %v274_v13, %v341_v15 }
  0xb7   :  { %407 = vmatprep.subr.mxu1 %v364_v17 }
  0xb8   :  { %408 = vmatpush1.msra.mxu1 %v363_v2 }
  0xb9   :  { %1550 = vmatmul.mubr.msk.f32.vlgmr.msra.gmra.mxu1 %vm181_vm9, %v35_v5 }
  0xba   :  { %935 = vmatprep.mubr.f32.mxu1 %v1658_v4 }
 0x171   :  { %v257_v18 = vpop.f32.mrf.mxu0 }
 0x172   :  { %v460_v21 = vmul.f32 %v257_v18, %v257_v18  ;;  %v448_v0 = vsel %vm172_vm1, %v257_v18, 0.0 }
 0x173   :  { %v259_v22 = vpop.f32.mrf.mxu0 }
 0x174   :  { %v461_v23 = vmul.f32 %v259_v22, %v259_v22  ;;  %v449_v24 = vsel %vm172_vm1, %v259_v22, 0.0  ;;  %v462_v3 = vsel %vm172_vm1, %v460_v21, 0.0 }
 0x175   :  { %v450_v25 = vadd.f32 %v449_v24, %v448_v0 }
 0x176   :  { %v463_v26 = vsel %vm172_vm1, %v461_v23, 0.0 }
 0x177   :  { %451 = vadd.xlane.f32.xlu0 %v450_v25  ;;  %v464_v28 = vadd.f32 %v463_v26, %v462_v3 }
 0x179   :  { %v443_v27 = vpop.f32.mrf.mxu1 }
 0x17a   :  { %v468_v29 = vmul.f32 %v443_v27, %v443_v27  ;;  %v454_v31 = vsel %vm172_vm1, %v443_v27, 0.0 }
 0x17b   :  { %465 = vadd.xlane.f32.xlu0 %v464_v28  ;;  %v445_v30 = vpop.f32.mrf.mxu1 }
 0x17c   :  { %v469_v1 = vmul.f32 %v445_v30, %v445_v30  ;;  %v455_v32 = vsel %vm172_vm1, %v445_v30, 0.0  ;;  %v470_v34 = vsel %vm172_vm1, %v468_v29, 0.0 }
 0x17d   :  { %v456_v33 = vadd.f32 %v455_v32, %v454_v31 }
 0x17e   :  { %v471_v35 = vsel %vm172_vm1, %v469_v1, 0.0 }
 0x17f   :  { %457 = vadd.xlane.f32.xlu1 %v456_v33  ;;  %v472_v36 = vadd.f32 %v471_v35, %v470_v34 }
 0x181   :  { %473 = vadd.xlane.f32.xlu0 %v472_v36 }
 0x200   :  { %v452_v38 = vpop.xlane.xlu0 %451 }
 0x204   :  { %v466_v39 = vpop.xlane.xlu0 %465 }
 0x208   :  { %v458_v40 = vpop.xlane.xlu1 %457 }
 0x209   :  { %v459_v41 = vadd.f32 %v458_v40, %v452_v38 }
 0x20a   :  { %v474_v42 = vpop.xlane.xlu0 %473 }
 0x20b   :  { %v477_v43 = vmul.f32 0.001953125, %v459_v41  ;;  %v475_v44 = vadd.f32 %v474_v42, %v466_v39 }
 0x20d   :  { %v479_v45 = vmul.f32 %v477_v43, %v477_v43  ;;  %v478_v46 = vmul.f32 0.001953125, %v475_v44 }
 0x20f   :  { %v480_v47 = vsub.f32 %v478_v46, %v479_v45 }
 0x211   :  { %v481_v49 = vmax.f32 %v480_v47, 0.0 }
 0x213   :  { %v482_v50 = vadd.f32 1e-05, %v481_v49 }
 0x215   :  { %1600 = vrsqrt.f32 %v482_v50 }
 0x222   :  { %v1601_v52 = vpop.eup %1600 }
 0x223   :  { %v484_v53 = vmul.f32 %v1601_v52, %v38_v51 }
 0x225   :  { %489 = vperm.xlu1 %1594, %v484_v53   ;;  %v485_v55 = vmul.f32 %v484_v53, %v477_v43 }
 0x227   :  { %v486_v56 = vsub.f32 %v39_v54, %v485_v55 }
 0x229   :  { %496 = vperm.xlu0 %1595, %v486_v56  }
 0x2a0   :  { %v490_v57 = vpop.permute.xlu1 %489 }
 0x2a1   :  { %v492_v58 = vmul.f32 %v490_v57, %v257_v18  ;;  %v493_v59 = vmul.f32 %v490_v57, %v259_v22  ;;  %v501_v60 = vmul.f32 %v490_v57, %v443_v27  ;;  %v502_v61 = vmul.f32 %v490_v57, %v445_v30 }
 0x2a4   :  { %v497_v62 = vpop.permute.xlu0 %496 }
 0x2a5   :  { %v1912_v63 = vadd.f32 %v497_v62, %v492_v58  ;;  %v1914_v5 = vadd.f32 %v497_v62, %v493_v59  ;;  %v1916_v6 = vadd.f32 %v501_v60, %v497_v62  ;;  %v1918_v7 = vadd.f32 %v502_v61, %v497_v62 }
 0x2a7   :  { %v507_v8 = vand.u32 2147483647, %v1912_v63  ;;  %v508_v10 = vand.u32 2147483647, %v1914_v5  ;;  %v541_v11 = vand.u32 2147483647, %v1916_v6 }
 0x2a8   :  { %v542_v12 = vand.u32 2147483647, %v1918_v7  ;;  %v506_v41 = vmax.f32 %v1914_v5, 0.0  ;;  %v505_v52 = vmax.f32 %v1912_v63, 0.0  ;;  %v540_v53 = vmax.f32 %v1918_v7, 0.0 }
 0x2a9   :  { %v509_v13 = vsub.f32 0.0, %v507_v8  ;;  %v510_v14 = vsub.f32 0.0, %v508_v10  ;;  %v543_v15 = vsub.f32 0.0, %v541_v11  ;;  %v539_v62 = vmax.f32 %v1916_v6, 0.0 }
 0x2aa   :  { %v544_v16 = vsub.f32 0.0, %v542_v12 }
 0x2ab   :  { %v511_v17 = vmul.f32 1.442695, %v509_v13  ;;  %v513_v2 = vmul.f32 1.442695, %v510_v14  ;;  %v545_v18 = vmul.f32 1.442695, %v543_v15 }
 0x2ac   :  { %v547_v21 = vmul.f32 1.442695, %v544_v16 }
 0x2ad   :  { %1602 = vpow2.f32 %v511_v17 }
 0x2ae   :  { %1604 = vpow2.f32 %v513_v2 }
 0x2af   :  { %1606 = vpow2.f32 %v545_v18 }
 0x2b0   :  { %1608 = vpow2.f32 %v547_v21 }
 0x2ba   :  { %v1603_v0 = vpop.eup %1602 }
 0x2bb   :  { %v1605_v22 = vpop.eup %1604  ;;  %v515_v23 = vadd.f32 1.0, %v1603_v0  ;;  %v518_v29 = vmul.f32 -0.5, %v1603_v0  ;;  %v521_v34 = vand.u32 2147483647, %v1603_v0 }
 0x2bc   :  { %v1607_v24 = vpop.eup %1606  ;;  %v524_v25 = vadd.f32 1.0, %v1605_v22  ;;  %v527_v28 = vmul.f32 -0.5, %v1605_v22  ;;  %v530_v32 = vand.u32 2147483647, %v1605_v22 }
 0x2bd   :  { %v1609_v3 = vpop.eup %1608  ;;  %1610 = vlog2.f32 %v515_v23  ;;  %v549_v26 = vadd.f32 1.0, %v1607_v24  ;;  %v519_v31 = vadd.f32 1.0, %v518_v29  ;;  %v552_v43 = vmul.f32 -0.5, %v1607_v24 }
 0x2be   :  { %1612 = vlog2.f32 %v524_v25  ;;  %v558_v27 = vadd.f32 1.0, %v1609_v3  ;;  %v561_v30 = vmul.f32 -0.5, %v1609_v3  ;;  %v528_v1 = vadd.f32 1.0, %v527_v28 }
 0x2bf   :  { %v564_v40 = vand.u32 2147483647, %v1609_v3  ;;  %v520_v42 = vmul.f32 %v1603_v0, %v519_v31  ;;  %vm531_vm10 = vcmp.lt.f32.partialorder %v530_v32, 0.0004427343  ;;  %vm522_vm11 = vcmp.lt.f32.partialorder %v521_v34, 0.0004427343 }
 0x2c0   :  { %1614 = vlog2.f32 %v558_v27  ;;  %v562_v37 = vadd.f32 1.0, %v561_v30  ;;  %v529_v39 = vmul.f32 %v1605_v22, %v528_v1  ;;  %v553_v54 = vadd.f32 1.0, %v552_v43 }
 0x2c1   :  { %1616 = vlog2.f32 %v549_v26  ;;  %vm565_vm12 = vcmp.lt.f32.partialorder %v564_v40, 0.0004427343  ;;  %v555_v57 = vand.u32 2147483647, %v1607_v24 }
 0x2c2   :  { %v563_v50 = vmul.f32 %v1609_v3, %v562_v37  ;;  %v554_v60 = vmul.f32 %v1607_v24, %v553_v54 }
 0x2c3   :  { %vm556_vm13 = vcmp.lt.f32.partialorder %v555_v57, 0.0004427343 }
 0x2ca   :  { %v1611_v33 = vpop.eup %1610 }
 0x2cb   :  { %v1613_v35 = vpop.eup %1612  ;;  %v517_v36 = vmul.f32 0.6931472, %v1611_v33 }
 0x2cc   :  { %v526_v38 = vmul.f32 0.6931472, %v1613_v35 }
 0x2cd   :  { %v1615_v44 = vpop.eup %1614  ;;  %v523_v46 = vsel %vm522_vm11, %v520_v42, %v517_v36 }
 0x2ce   :  { %v532_v45 = vsel %vm531_vm10, %v529_v39, %v526_v38  ;;  %v560_v49 = vmul.f32 0.6931472, %v1615_v44  ;;  %v1617_v51 = vpop.eup %1616  ;;  %v533_v56 = vadd.f32 %v523_v46, %v505_v52 }
 0x2cf   :  { %v534_v47 = vadd.f32 %v532_v45, %v506_v41  ;;  %v551_v59 = vmul.f32 0.6931472, %v1617_v51 }
 0x2d0   :  { %v566_v55 = vsel %vm565_vm12, %v563_v50, %v560_v49 }
 0x2d1   :  { %1618 = vtanh.f32 %v534_v47  ;;  %v568_v58 = vadd.f32 %v566_v55, %v540_v53  ;;  %v557_v61 = vsel %vm556_vm13, %v554_v60, %v551_v59 }
 0x2d2   :  { %v567_v8 = vadd.f32 %v557_v61, %v539_v62 }
 0x2d3   :  { %1620 = vtanh.f32 %v568_v58 }
 0x2d4   :  { %1622 = vtanh.f32 %v533_v56 }
 0x2d5   :  { %1624 = vtanh.f32 %v567_v8 }
 0x2de   :  { %v1619_v10 = vpop.eup %1618 }
 0x2df   :  { %v1929_v11 = vmul.f32 %v1619_v10, %v1914_v5 }
 0x2e0   :  { %v1621_v12 = vpop.eup %1620 }
 0x2e1   :  { %641 = vrot.lane.b32.xlu1 %v1929_v11, %s1653_s14  ;;  %v1934_v13 = vmul.f32 %v1621_v12, %v1918_v7  ;;  %v1623_v14 = vpop.eup %1622 }
 0x2e2   :  { %v1941_v15 = vmul.f32 %v1623_v14, %v1912_v63  ;;  %v1625_v5 = vpop.eup %1624 }
 0x2e3   :  { %820 = vrot.lane.b32.xlu0 %v1934_v13, %s1655_s16  ;;  %v1952_v7 = vmul.f32 %v1625_v5, %v1916_v6 }
 0x2e5   :  { %827 = vrot.lane.b32.xlu1 %v1934_v13, %s1653_s14 }
 0x2e7   :  { %612 = vrot.lane.b32.xlu0 %v1941_v15, %s1652_s13 }
 0x2e9   :  { %614 = vrot.lane.b32.xlu1 %v1929_v11, %s1652_s13 }
 0x2eb   :  { %632 = vrot.lane.b32.xlu0 %v1941_v15, %s1655_s16 }
 0x2ed   :  { %624 = vrot.lane.b32.xlu1 %v1929_v11, %s1654_s15 }
 0x2ef   :  { %808 = vrot.lane.b32.xlu0 %v1952_v7, %s1654_s15 }
 0x2f1   :  { %634 = vrot.lane.b32.xlu1 %v1929_v11, %s1655_s16 }
 0x2f3   :  { %602 = vrot.lane.b32.xlu0 %v1941_v15, %s1656_s17 }
 0x2f5   :  { %639 = vrot.lane.b32.xlu1 %v1941_v15, %s1653_s14 }
 0x2f7   :  { %788 = vrot.lane.b32.xlu0 %v1952_v7, %s1656_s17 }
 0x2f9   :  { %800 = vrot.lane.b32.xlu1 %v1934_v13, %s1652_s13 }
 0x2fb   :  { %592 = vrot.lane.b32.xlu0 %v1941_v15, %s1657_s18 }
 0x2fd   :  { %810 = vrot.lane.b32.xlu1 %v1934_v13, %s1654_s15 }
 0x2ff   :  { %778 = vrot.lane.b32.xlu0 %v1952_v7, %s1657_s18 }
 0x301   :  { %825 = vrot.lane.b32.xlu1 %v1952_v7, %s1653_s14 }
 0x303   :  { %575 = vrot.lane.b32.xlu0 %v1941_v15, %s1659_s19 }
 0x305   :  { %622 = vrot.lane.b32.xlu1 %v1941_v15, %s1654_s15 }
 0x307   :  { %585 = vrot.lane.b32.xlu0 %v1941_v15, %s1660_s20 }
 0x309   :  { %798 = vrot.lane.b32.xlu1 %v1952_v7, %s1652_s13 }
 0x30b   :  { %761 = vrot.lane.b32.xlu0 %v1952_v7, %s1659_s19 }
 0x30d   :  { %818 = vrot.lane.b32.xlu1 %v1952_v7, %s1655_s16 }
 0x30f   :  { %771 = vrot.lane.b32.xlu0 %v1952_v7, %s1660_s20 }
 0x311   :  { %604 = vrot.lane.b32.xlu1 %v1929_v11, %s1656_s17 }
 0x315   :  { %790 = vrot.lane.b32.xlu1 %v1934_v13, %s1656_s17 }
 0x319   :  { %594 = vrot.lane.b32.xlu1 %v1929_v11, %s1657_s18 }
 0x31d   :  { %780 = vrot.lane.b32.xlu1 %v1934_v13, %s1657_s18 }
 0x321   :  { %577 = vrot.lane.b32.xlu1 %v1929_v11, %s1659_s19 }
 0x325   :  { %587 = vrot.lane.b32.xlu1 %v1929_v11, %s1660_s20 }
 0x329   :  { %763 = vrot.lane.b32.xlu1 %v1934_v13, %s1659_s19 }
 0x32d   :  { %773 = vrot.lane.b32.xlu1 %v1934_v13, %s1660_s20 }
 0x353   :  { %v642_v63 = vpop.permute.xlu1 %641 }
 0x354   :  { %v646_v6 = vsel %vm142_vm0, %v642_v63, 0.0 }
 0x355   :  { %v648_v16 = vmul.f32 %v646_v6, %v1800_v9  ;;  %v821_v2 = vpop.permute.xlu0 %820 }
 0x356   :  { %v824_v38 = vsel %vm134_vm3, %v821_v2, 0.0 }
 0x357   :  { %1551 = vmatprep.subr.msk.mxu0 %vm172_vm1, %v648_v16  ;;  %v828_v17 = vpop.permute.xlu1 %827  ;;  %v854_v44 = vrot.slane %v824_v38, 4 }
 0x358   :  { %v832_v18 = vsel %vm142_vm0, %v828_v17, 0.0 }
 0x359   :  { %v834_v21 = vmul.f32 %v832_v18, %v1800_v9  ;;  %v613_v22 = vpop.permute.xlu0 %612 }
 0x35b   :  { %1554 = vmatprep.subr.msk.mxu1 %vm172_vm1, %v834_v21  ;;  %v615_v0 = vpop.permute.xlu1 %614 }
 0x35c   :  { %v619_v37 = vsel %vm112_vm4, %v615_v0, 0.0  ;;  %v616_v39 = vsel %vm112_vm4, %v613_v22, %v615_v0 }
 0x35d   :  { %v633_v25 = vpop.permute.xlu0 %632  ;;  %v621_v42 = vmul.f32 %v619_v37, %v1800_v9  ;;  %v620_v45 = vmul.f32 %v616_v39, %v1811_v20 }
 0x35f   :  { %v625_v23 = vpop.permute.xlu1 %624  ;;  %v663_v52 = vrot.slane %v621_v42, 4  ;;  %v662_v54 = vrot.slane %v620_v45, 4 }
 0x360   :  { %v629_v26 = vsel %vm123_vm2, %v625_v23, 0.0 }
 0x361   :  { %v631_v30 = vmul.f32 %v629_v26, %v1809_v19  ;;  %v809_v31 = vpop.permute.xlu0 %808  ;;  %v676_v8 = vsel %vm172_vm1, %v1929_v11, %v663_v52  ;;  %v675_v12 = vsel %vm172_vm1, %v1941_v15, %v662_v54 }
 0x363   :  { %v635_v24 = vpop.permute.xlu1 %634 }
 0x364   :  { %v638_v3 = vsel %vm134_vm3, %v635_v24, 0.0  ;;  %v636_v47 = vsel %vm134_vm3, %v633_v25, %v635_v24 }
 0x365   :  { %v668_v27 = vrot.slane %v638_v3, 4  ;;  %v603_v35 = vpop.permute.xlu0 %602  ;;  %v667_v55 = vrot.slane %v636_v47, 4 }
 0x367   :  { %v640_v28 = vpop.permute.xlu1 %639  ;;  %v678_v33 = vsel %vm172_vm1, %v631_v30, %v668_v27 }
 0x368   :  { %v643_v29 = vsel %vm142_vm0, %v640_v28, %v642_v63 }
 0x369   :  { %v647_v1 = vmul.f32 %v643_v29, %v1811_v20  ;;  %v789_v49 = vpop.permute.xlu0 %788 }
 0x36b   :  { %1552 = vmatpush1.msk.msra.mxu0 %vm172_vm1, %v647_v1  ;;  %v801_v32 = vpop.permute.xlu1 %800 }
 0x36c   :  { %712 = vmatprep.subr.mxu0 %v678_v33  ;;  %v805_v56 = vsel %vm112_vm4, %v801_v32, 0.0 }
 0x36d   :  { %v807_v60 = vmul.f32 %v805_v56, %v1800_v9  ;;  %v593_v61 = vpop.permute.xlu0 %592 }
 0x36e   :  { %v599_v3 = vsel %vm79_vm6, 0.0, %v593_v61 }
 0x36f   :  { %v811_v34 = vpop.permute.xlu1 %810  ;;  %v849_v63 = vrot.slane %v807_v60, 4  ;;  %v36_v60 = vld [vmem:[%s2153_s4] sm:$0xf] }
 0x370   :  { %v815_v36 = vsel %vm123_vm2, %v811_v34, 0.0  ;;  %v812_v14 = vsel %vm123_vm2, %v809_v31, %v811_v34 }
 0x371   :  { %v817_v40 = vmul.f32 %v815_v36, %v1809_v19  ;;  %v816_v16 = vmul.f32 %v812_v14, %v1833_v48  ;;  %v779_v21 = vpop.permute.xlu0 %778  ;;  %v862_v22 = vsel %vm172_vm1, %v1934_v13, %v849_v63  ;;  %v795_v13 = vsel %vm101_vm5, 0.0, %v789_v49 }
 0x372   :  { %v785_v1 = vsel %vm79_vm6, 0.0, %v779_v21 }
 0x373   :  { %v826_v41 = vpop.permute.xlu1 %825  ;;  %v864_v51 = vsel %vm172_vm1, %v817_v40, %v854_v44  ;;  %v786_v39 = vmul.f32 %v785_v1, %v1811_v20 }
 0x374   :  { %v829_v43 = vsel %vm142_vm0, %v826_v41, %v828_v17 }
 0x375   :  { %v833_v46 = vmul.f32 %v829_v43, %v1811_v20  ;;  %v576_v25 = vpop.permute.xlu0 %575 }
 0x377   :  { %1555 = vmatpush1.msk.msra.mxu1 %vm172_vm1, %v833_v46  ;;  %v623_v50 = vpop.permute.xlu1 %622 }
 0x378   :  { %v626_v53 = vsel %vm123_vm2, %v623_v50, %v625_v23  ;;  %895 = vmatprep.subr.mxu1 %v864_v51  ;;  %v582_v51 = vsel %vm49_vm7, 0.0, %v576_v25 }
 0x379   :  { %v630_v57 = vmul.f32 %v626_v53, %v1833_v48  ;;  %v586_v36 = vpop.permute.xlu0 %585  ;;  %v583_v56 = vmul.f32 %v582_v51, %v1833_v48 }
 0x37a   :  { %v591_v50 = vsel %vm71_vm8, 0.0, %v586_v36 }
 0x37b   :  { %v799_v58 = vpop.permute.xlu1 %798  ;;  %v677_v59 = vsel %vm172_vm1, %v630_v57, %v667_v55  ;;  %v650_v53 = vrot.slane %v591_v50, 4 }
 0x37c   :  { %v802_v62 = vsel %vm112_vm4, %v799_v58, %v801_v32  ;;  %713 = vmatpush1.msra.mxu0 %v677_v59 }
 0x37d   :  { %v806_v10 = vmul.f32 %v802_v62, %v1811_v20  ;;  %714 = vmatprep.subr.mxu0 %v676_v8  ;;  %v762_v47 = vpop.permute.xlu0 %761 }
 0x37e   :  { %715 = vmatpush1.msra.mxu0 %v675_v12 }
 0x37f   :  { %v819_v5 = vpop.permute.xlu1 %818  ;;  %v848_v17 = vrot.slane %v806_v10, 4  ;;  %v768_v10 = vsel %vm49_vm7, 0.0, %v762_v47 }
 0x380   :  { %v822_v6 = vsel %vm134_vm3, %v819_v5, %v821_v2  ;;  %v609_v2 = vsel %vm101_vm5, 0.0, %v603_v35 }
 0x381   :  { %v853_v18 = vrot.slane %v822_v6, 4  ;;  %v861_v15 = vsel %vm172_vm1, %v1952_v7, %v848_v17  ;;  %v610_v27 = vmul.f32 %v609_v2, %v1833_v48  ;;  %v600_v7 = vmul.f32 %v599_v3, %v1811_v20  ;;  %v772_v57 = vpop.permute.xlu0 %771 }
 0x382   :  { %v777_v62 = vsel %vm71_vm8, 0.0, %v772_v57 }
 0x383   :  { %v605_v0 = vpop.permute.xlu1 %604  ;;  %v863_v11 = vsel %vm172_vm1, %v816_v16, %v853_v18  ;;  %v656_v34 = vrot.slane %v610_v27, 4  ;;  %v836_v14 = vrot.slane %v777_v62, 4  ;;  %v769_v16 = vmul.f32 %v768_v10, %v1833_v48 }
 0x384   :  { %896 = vmatpush1.msra.mxu1 %v863_v11  ;;  %v606_v23 = vsel %vm101_vm5, %v603_v35, %v605_v0  ;;  %v796_v35 = vmul.f32 %v795_v13, %v1833_v48 }
 0x385   :  { %897 = vmatprep.subr.mxu1 %v862_v22  ;;  %v611_v26 = vmul.f32 %v606_v23, %v1809_v19  ;;  %v673_v41 = vsel %vm172_vm1, %v600_v7, %v656_v34  ;;  %v857_v18 = vsel %vm172_vm1, %v769_v16, %v836_v14 }
 0x386   :  { %898 = vmatpush1.msra.mxu1 %v861_v15  ;;  %v842_v44 = vrot.slane %v796_v35, 4 }
 0x387   :  { %v791_v24 = vpop.permute.xlu1 %790  ;;  %v657_v31 = vrot.slane %v611_v26, 4 }
 0x388   :  { %v792_v28 = vsel %vm101_vm5, %v789_v49, %v791_v24  ;;  %v859_v49 = vsel %vm172_vm1, %v786_v39, %v842_v44 }
 0x389   :  { %v797_v32 = vmul.f32 %v792_v28, %v1809_v19 }
 0x38b   :  { %v595_v29 = vpop.permute.xlu1 %594  ;;  %v843_v42 = vrot.slane %v797_v32, 4 }
 0x38c   :  { %v596_v30 = vsel %vm79_vm6, %v593_v61, %v595_v29  ;;  %v671_v61 = vsel %vm172_vm1, %v583_v56, %v650_v53 }
 0x38d   :  { %v601_v33 = vmul.f32 %v596_v30, %v1800_v9 }
 0x38f   :  { %v781_v37 = vpop.permute.xlu1 %780  ;;  %v674_v38 = vsel %vm172_vm1, %v601_v33, %v657_v31 }
 0x390   :  { %v782_v40 = vsel %vm79_vm6, %v779_v21, %v781_v37  ;;  %716 = vmatprep.subr.mxu0 %v674_v38 }
 0x391   :  { %v787_v43 = vmul.f32 %v782_v40, %v1800_v9  ;;  %717 = vmatpush1.msra.mxu0 %v673_v41 }
 0x393   :  { %v578_v45 = vpop.permute.xlu1 %577  ;;  %v860_v46 = vsel %vm172_vm1, %v787_v43, %v843_v42  ;;  %v40_v43 = vld [vmem:[%s2154_s5] sm:$0xf] }
 0x394   :  { %899 = vmatprep.subr.mxu1 %v860_v46  ;;  %v579_v20 = vsel %vm49_vm7, %v576_v25, %v578_v45  ;;  %v41_v46 = vld [vmem:[%s2155_s6] sm:$0xf] }
 0x395   :  { %900 = vmatpush1.msra.mxu1 %v859_v49  ;;  %v584_v54 = vmul.f32 %v579_v20, %v1809_v19  ;;  %v37_v49 = vld [vmem:[%s2156_s7] sm:$0xf] }
 0x397   :  { %v588_v52 = vpop.permute.xlu1 %587 }
 0x398   :  { %v589_v9 = vsel %vm71_vm8, %v586_v36, %v588_v52 }
 0x399   :  { %v651_v55 = vrot.slane %v589_v9, 4 }
 0x39b   :  { %v764_v58 = vpop.permute.xlu1 %763  ;;  %v672_v59 = vsel %vm172_vm1, %v584_v54, %v651_v55 }
 0x39c   :  { %718 = vmatprep.subr.mxu0 %v672_v59  ;;  %v765_v8 = vsel %vm49_vm7, %v762_v47, %v764_v58 }
 0x39d   :  { %719 = vmatpush1.msra.mxu0 %v671_v61  ;;  %v770_v63 = vmul.f32 %v765_v8, %v1809_v19 }
 0x39e   :  { %1553 = vmatmul.mubr.msk.f32.vlgmr.msra.gmra.mxu0 %vm181_vm9, %v36_v60 }
 0x39f   :  { %v774_v12 = vpop.permute.xlu1 %773 }
 0x3a0   :  { %v775_v5 = vsel %vm71_vm8, %v772_v57, %v774_v12  ;;  %v1225_v12 = vld [vmem:[%s2148_s0] sm:$0xff] }
 0x3a1   :  { %v837_v6 = vrot.slane %v775_v5, 4 }
 0x3a3   :  { %v858_v17 = vsel %vm172_vm1, %v770_v63, %v837_v6  ;;  %v1227_v63 = vcombine.high %v1225_v12, %v1225_v12 }
 0x3a4   :  { %901 = vmatprep.subr.mxu1 %v858_v17 }
 0x3a5   :  { %902 = vmatpush1.msra.mxu1 %v857_v18 }
 0x3a6   :  { %1556 = vmatmul.mubr.msk.f32.vlgmr.msra.gmra.mxu1 %vm181_vm9, %v36_v60  ;;  %1573 = vmatprep.subr.mxu1 %v1658_v4 }
 0x3a7   :  { %1574 = vmatpush3.msk.msra.mxu1 %vm172_vm1, %v37_v49  ;;  %1575 = vmatprep.mubr.msk.f32.mxu1 %vm1662_vm14, %v1658_v4 }
 0x45e   :  { %v754_v21 = vpop.f32.mrf.mxu0 }
 0x45f   :  { %v954_v0 = vmul.f32 %v754_v21, %v754_v21  ;;  %v942_v11 = vsel %vm172_vm1, %v754_v21, 0.0 }
 0x460   :  { %v756_v22 = vpop.f32.mrf.mxu0 }
 0x461   :  { %v955_v15 = vmul.f32 %v756_v22, %v756_v22  ;;  %v943_v19 = vsel %vm172_vm1, %v756_v22, 0.0  ;;  %v956_v48 = vsel %vm172_vm1, %v954_v0, 0.0 }
 0x462   :  { %v944_v23 = vadd.f32 %v943_v19, %v942_v11 }
 0x463   :  { %v957_v2 = vsel %vm172_vm1, %v955_v15, 0.0 }
 0x464   :  { %945 = vadd.xlane.f32.xlu0 %v944_v23  ;;  %v958_v25 = vadd.f32 %v957_v2, %v956_v48 }
 0x466   :  { %v937_v24 = vpop.f32.mrf.mxu1 }
 0x467   :  { %v962_v3 = vmul.f32 %v937_v24, %v937_v24  ;;  %v948_v28 = vsel %vm172_vm1, %v937_v24, 0.0 }
 0x468   :  { %959 = vadd.xlane.f32.xlu0 %v958_v25  ;;  %v939_v26 = vpop.f32.mrf.mxu1 }
 0x469   :  { %v963_v27 = vmul.f32 %v939_v26, %v939_v26  ;;  %v949_v13 = vsel %vm172_vm1, %v939_v26, 0.0  ;;  %v964_v7 = vsel %vm172_vm1, %v962_v3, 0.0 }
 0x46a   :  { %v950_v29 = vadd.f32 %v949_v13, %v948_v28 }
 0x46b   :  { %v965_v30 = vsel %vm172_vm1, %v963_v27, 0.0 }
 0x46c   :  { %951 = vadd.xlane.f32.xlu1 %v950_v29  ;;  %v966_v1 = vadd.f32 %v965_v30, %v964_v7 }
 0x46e   :  { %967 = vadd.xlane.f32.xlu0 %v966_v1 }
 0x4ed   :  { %v946_v31 = vpop.xlane.xlu0 %945 }
 0x4f1   :  { %v960_v32 = vpop.xlane.xlu0 %959 }
 0x4f5   :  { %v952_v33 = vpop.xlane.xlu1 %951 }
 0x4f6   :  { %v953_v34 = vadd.f32 %v952_v33, %v946_v31 }
 0x4f7   :  { %v968_v35 = vpop.xlane.xlu0 %967 }
 0x4f8   :  { %v970_v36 = vmul.f32 0.001953125, %v953_v34  ;;  %v969_v37 = vadd.f32 %v968_v35, %v960_v32 }
 0x4fa   :  { %v972_v38 = vmul.f32 %v970_v36, %v970_v36  ;;  %v971_v39 = vmul.f32 0.001953125, %v969_v37 }
 0x4fc   :  { %v973_v40 = vsub.f32 %v971_v39, %v972_v38 }
 0x4fe   :  { %v974_v41 = vmax.f32 %v973_v40, 0.0 }
 0x500   :  { %v975_v42 = vadd.f32 1e-05, %v974_v41 }
 0x502   :  { %1626 = vrsqrt.f32 %v975_v42 }
 0x50f   :  { %v1627_v44 = vpop.eup %1626 }
 0x510   :  { %v977_v45 = vmul.f32 %v1627_v44, %v40_v43 }
 0x512   :  { %982 = vperm.xlu1 %1594, %v977_v45   ;;  %v978_v47 = vmul.f32 %v977_v45, %v970_v36  ;;  %v1567_v45 = vld [vmem:[%s2148_s0 + $0x8] sm:$0xff] }
 0x514   :  { %v979_v50 = vsub.f32 %v41_v46, %v978_v47 }
 0x516   :  { %989 = vperm.xlu0 %1595, %v979_v50  }
 0x58d   :  { %v983_v20 = vpop.permute.xlu1 %982 }
 0x58e   :  { %v985_v51 = vmul.f32 %v983_v20, %v754_v21  ;;  %v986_v52 = vmul.f32 %v983_v20, %v756_v22  ;;  %v994_v53 = vmul.f32 %v983_v20, %v937_v24  ;;  %v995_v9 = vmul.f32 %v983_v20, %v939_v26 }
 0x591   :  { %v990_v54 = vpop.permute.xlu0 %989 }
 0x592   :  { %v992_v55 = vadd.f32 %v990_v54, %v985_v51  ;;  %v993_v56 = vadd.f32 %v990_v54, %v986_v52  ;;  %v2108_v57 = vadd.f32 %v994_v53, %v990_v54  ;;  %v2110_v58 = vadd.f32 %v995_v9, %v990_v54 }
 0x594   :  { %1028 = vmatprep.subr.mxu0 %v993_v56  ;;  %1062 = vmatprep.mubr.f32.mxu0 %v993_v56 }
 0x595   :  { %1300 = vmatprep.subr.mxu1 %v2110_v58  ;;  %1029 = vmatpush1.xpose.msra.mxu0 %v992_v55 }
 0x596   :  { %1559 = vmatprep.subr.msk.mxu0 %vm172_vm1, %v993_v56 }
 0x598   :  { %1063 = vmatmul.mubr.f32.vlgmr.msra.gmra.mxu0 %v992_v55 }
 0x599   :  { %1560 = vmatpush1.msk.msra.mxu0 %vm172_vm1, %v992_v55  ;;  %1218 = vmatprep.mubr.f32.mxu0 %v1658_v4 }
 0x59a   :  { %1578 = vmatprep.subr.mxu0 %v1658_v4 }
 0x658   :  { %v1064_v59 = vpop.f32.mrf.mxu0 }
 0x659   :  { %1576 = vmatmul.mubr.msk.f32.vlgmr.msra.gmra.mxu1 %vm1068_vm15, %v1064_v59 }
 0x65a   :  { %1301 = vmatpush1.xpose.msra.mxu1 %v2108_v57  ;;  %v1066_v60 = vpop.f32.mrf.mxu0  ;;  %1334 = vmatprep.mubr.f32.mxu1 %v2110_v58 }
 0x65b   :  { %1564 = vmatprep.subr.msk.mxu1 %vm172_vm1, %v2110_v58 }
 0x65d   :  { %1335 = vmatmul.mubr.f32.vlgmr.msra.gmra.mxu1 %v2108_v57 }
 0x65e   :  { %1565 = vmatpush1.msk.msra.mxu1 %vm172_vm1, %v2108_v57  ;;  %1486 = vmatprep.mubr.f32.mxu1 %v1658_v4 }
 0x719   :  { %v1141_v61 = vpop.f32.mrf.mxu1 }
 0x71a   :  { %1561 = vmatmul.mubr.msk.f32.vlgmr.msra.gmra.mxu0 %vm1068_vm15, %v1141_v61 }
 0x71b   :  { %v1577_v62 = vpop.f32.mrf.mxu1  ;;  %1579 = vmatpush3.msk.msra.mxu0 %vm172_vm1, %v37_v49  ;;  %1580 = vmatprep.mubr.msk.f32.mxu0 %vm1662_vm14, %v1658_v4  ;;  %v1495_v49 = vcombine.high %v1567_v45, %v1567_v45 }
 0x71d   :  { %v1336_v8 = vpop.f32.mrf.mxu1 }
 0x71e   :  { %1581 = vmatmul.mubr.msk.f32.vlgmr.msra.gmra.mxu0 %vm1068_vm15, %v1336_v8 }
 0x71f   :  { %v1338_v10 = vpop.f32.mrf.mxu1 }
 0x7da   :  { %v1220_v14 = vpop.f32.mrf.mxu0 }
 0x7db   :  { %v1221_v5 = vadd.f32 %v1220_v14, %v992_v55 }
 0x7dc   :  { %v1222_v6 = vpop.f32.mrf.mxu0 }
 0x7dd   :  { %v1229_v16 = vadd.f32 %v1225_v12, %v1221_v5  ;;  %v1223_v17 = vadd.f32 %v1222_v6, %v993_v56 }
 0x7de   :  { %v1409_v18 = vpop.f32.mrf.mxu0 }
 0x7df   :  { %v1233_v21 = vand.u32 2147483647, %v1229_v16  ;;  %v1230_v0 = vadd.f32 %v1227_v63, %v1223_v17  ;;  %1566 = vmatmul.mubr.msk.f32.vlgmr.msra.gmra.mxu1 %vm1068_vm15, %v1409_v18  ;;  %v1231_v32 = vmax.f32 %v1229_v16, 0.0 }
 0x7e0   :  { %v1582_v4 = vpop.f32.mrf.mxu0 }
 0x7e1   :  { %v1235_v11 = vsub.f32 0.0, %v1233_v21  ;;  %v1234_v22 = vand.u32 2147483647, %v1230_v0  ;;  %v1232_v37 = vmax.f32 %v1230_v0, 0.0 }
 0x7e3   :  { %v1237_v15 = vmul.f32 1.442695, %v1235_v11  ;;  %v1236_v19 = vsub.f32 0.0, %v1234_v22 }
 0x7e5   :  { %1628 = vpow2.f32 %v1237_v15  ;;  %v1239_v23 = vmul.f32 1.442695, %v1236_v19 }
 0x7e7   :  { %1630 = vpow2.f32 %v1239_v23 }
 0x7f2   :  { %v1629_v48 = vpop.eup %1628 }
 0x7f3   :  { %v1241_v2 = vadd.f32 1.0, %v1629_v48  ;;  %v1244_v3 = vmul.f32 -0.5, %v1629_v48  ;;  %v1247_v28 = vand.u32 2147483647, %v1629_v48 }
 0x7f4   :  { %v1631_v24 = vpop.eup %1630 }
 0x7f5   :  { %1632 = vlog2.f32 %v1241_v2  ;;  %v1250_v25 = vadd.f32 1.0, %v1631_v24  ;;  %v1253_v26 = vmul.f32 -0.5, %v1631_v24  ;;  %v1245_v27 = vadd.f32 1.0, %v1244_v3 }
 0x7f6   :  { %v1256_v7 = vand.u32 2147483647, %v1631_v24  ;;  %vm1248_vm0 = vcmp.lt.f32.partialorder %v1247_v28, 0.0004427343 }
 0x7f7   :  { %1634 = vlog2.f32 %v1250_v25  ;;  %v1254_v13 = vadd.f32 1.0, %v1253_v26  ;;  %v1246_v1 = vmul.f32 %v1629_v48, %v1245_v27 }
 0x7f8   :  { %vm1257_vm1 = vcmp.lt.f32.partialorder %v1256_v7, 0.0004427343 }
 0x7f9   :  { %v1255_v35 = vmul.f32 %v1631_v24, %v1254_v13 }
 0x802   :  { %v1633_v29 = vpop.eup %1632 }
 0x803   :  { %v1243_v30 = vmul.f32 0.6931472, %v1633_v29 }
 0x804   :  { %v1635_v31 = vpop.eup %1634 }
 0x805   :  { %v1249_v33 = vsel %vm1248_vm0, %v1246_v1, %v1243_v30  ;;  %v1252_v34 = vmul.f32 0.6931472, %v1635_v31 }
 0x806   :  { %v1259_v36 = vadd.f32 %v1249_v33, %v1231_v32 }
 0x807   :  { %v1258_v38 = vsel %vm1257_vm1, %v1255_v35, %v1252_v34 }
 0x808   :  { %1636 = vtanh.f32 %v1259_v36  ;;  %v1260_v39 = vadd.f32 %v1258_v38, %v1232_v37 }
 0x80a   :  { %1638 = vtanh.f32 %v1260_v39 }
 0x815   :  { %v1637_v40 = vpop.eup %1636 }
 0x816   :  { %v1263_v42 = vmul.f32 %v1637_v40, %v1229_v16 }
 0x817   :  { %v1639_v41 = vpop.eup %1638 }
 0x818   :  { %v1264_v43 = vmul.f32 %v1639_v41, %v1230_v0 }
 0x81a   :  { %v1267_v44 = vcombine.low %v1263_v42, %v1264_v43 }
 0x81c   :  { %1269 = vst [vmem:[%s2157_s9] sm:$0xff] %v1267_v44 }
 0x89f   :  { %v1488_v46 = vpop.f32.mrf.mxu1 }
 0x8a0   :  { %v1489_v47 = vadd.f32 %v1488_v46, %v2108_v57 }
 0x8a1   :  { %v1490_v50 = vpop.f32.mrf.mxu1 }
 0x8a2   :  { %v1497_v20 = vadd.f32 %v1567_v45, %v1489_v47  ;;  %v1491_v51 = vadd.f32 %v1490_v50, %v2110_v58 }
 0x8a4   :  { %v1501_v52 = vand.u32 2147483647, %v1497_v20  ;;  %v1498_v53 = vadd.f32 %v1495_v49, %v1491_v51  ;;  %v1499_v18 = vmax.f32 %v1497_v20, 0.0 }
 0x8a6   :  { %v1503_v9 = vsub.f32 0.0, %v1501_v52  ;;  %v1502_v54 = vand.u32 2147483647, %v1498_v53  ;;  %v1500_v22 = vmax.f32 %v1498_v53, 0.0 }
 0x8a8   :  { %v1505_v55 = vmul.f32 1.442695, %v1503_v9  ;;  %v1504_v56 = vsub.f32 0.0, %v1502_v54 }
 0x8aa   :  { %1640 = vpow2.f32 %v1505_v55  ;;  %v1507_v59 = vmul.f32 1.442695, %v1504_v56 }
 0x8ac   :  { %1642 = vpow2.f32 %v1507_v59 }
 0x8b7   :  { %v1641_v60 = vpop.eup %1640 }
 0x8b8   :  { %v1509_v61 = vadd.f32 1.0, %v1641_v60  ;;  %v1512_v57 = vmul.f32 -0.5, %v1641_v60  ;;  %v1515_v14 = vand.u32 2147483647, %v1641_v60 }
 0x8b9   :  { %v1643_v62 = vpop.eup %1642 }
 0x8ba   :  { %1644 = vlog2.f32 %v1509_v61  ;;  %v1518_v8 = vadd.f32 1.0, %v1643_v62  ;;  %v1521_v10 = vmul.f32 -0.5, %v1643_v62  ;;  %v1513_v12 = vadd.f32 1.0, %v1512_v57 }
 0x8bb   :  { %v1524_v63 = vand.u32 2147483647, %v1643_v62  ;;  %vm1516_vm2 = vcmp.lt.f32.partialorder %v1515_v14, 0.0004427343 }
 0x8bc   :  { %1646 = vlog2.f32 %v1518_v8  ;;  %v1522_v58 = vadd.f32 1.0, %v1521_v10  ;;  %v1514_v16 = vmul.f32 %v1641_v60, %v1513_v12 }
 0x8bd   :  { %vm1525_vm3 = vcmp.lt.f32.partialorder %v1524_v63, 0.0004427343 }
 0x8be   :  { %v1523_v4 = vmul.f32 %v1643_v62, %v1522_v58 }
 0x8c7   :  { %v1645_v5 = vpop.eup %1644 }
 0x8c8   :  { %v1511_v6 = vmul.f32 0.6931472, %v1645_v5 }
 0x8c9   :  { %v1647_v17 = vpop.eup %1646 }
 0x8ca   :  { %v1517_v21 = vsel %vm1516_vm2, %v1514_v16, %v1511_v6  ;;  %v1520_v0 = vmul.f32 0.6931472, %v1647_v17 }
 0x8cb   :  { %v1527_v11 = vadd.f32 %v1517_v21, %v1499_v18 }
 0x8cc   :  { %v1526_v15 = vsel %vm1525_vm3, %v1523_v4, %v1520_v0 }
 0x8cd   :  { %1648 = vtanh.f32 %v1527_v11  ;;  %v1528_v19 = vadd.f32 %v1526_v15, %v1500_v22 }
 0x8cf   :  { %1650 = vtanh.f32 %v1528_v19 }
 0x8da   :  { %v1649_v23 = vpop.eup %1648 }
 0x8db   :  { %v1531_v2 = vmul.f32 %v1649_v23, %v1497_v20 }
 0x8dc   :  { %v1651_v48 = vpop.eup %1650 }
 0x8dd   :  { %v1532_v24 = vmul.f32 %v1651_v48, %v1498_v53 }
 0x8df   :  { %v1535_v25 = vcombine.low %v1531_v2, %v1532_v24 }
 0x8e1   :  { %1568 = vst [vmem:[%s2157_s9 + $0x8] sm:$0xff] %v1535_v25 }

</bundles_post_ra>
